<compile_context>
chip_gen: v7x
topology: tpu7x:2x2x1
jax: 0.10.0
libtpu: 0.0.40
codegen_flags: <defaults>
</compile_context>

<pallas_src>
import functools

import jax
import jax.numpy as jnp
import numpy as np
from jax.experimental import pallas as pl
from jax.experimental.pallas import tpu as pltpu


def _nested_inception_kernel(colidx_ref, x_ref, w1_ref, b1_ref, w2_ref, b2_ref,
                             w3_ref, b3_ref, wl1_ref, wl2_ref, wl3_ref, bl_ref,
                             o_ref, *, H, W, block_n):
    HW = H * W

    # Boundary masks over the flattened spatial (lane) axis, shared by every
    # conv and every image in the block.  (Requires H >= 2 and W >= 2.)
    col = colidx_ref[...]                                    # (1, HW) j-index
    lane = jax.lax.broadcasted_iota(jnp.int32, (1, HW), 1)   # i*W + j
    first_col = col == 0
    last_col = col == (W - 1)
    first_row = lane < W
    last_row = lane >= (H - 1) * W

    # Hoisted (tiny) weight / bias loads.
    w1 = w1_ref[...]
    w2 = w2_ref[...]
    w3 = w3_ref[...]
    b1 = b1_ref[...]
    b2 = b2_ref[...]
    b3 = b3_ref[...]
    wl1 = wl1_ref[...]
    wl2 = wl2_ref[...]
    wl3 = wl3_ref[...]
    bl = bl_ref[...]

    def shift(a, k):
        # result[..., p] = a[..., p + k]; wrapped entries are never selected.
        return jnp.concatenate([a[..., k:], a[..., :k]], axis=-1)

    def conv3x3_reflect(a, w, b):
        # a: (C, HW) row-major flattened image.
        # Reflect-padded 3x3 conv as a single im2col matmul:
        #   patch[(ki*3+kj)*C + c, i*W+j] = a[c, reflect(i+ki-1), reflect(j+kj-1)]
        up = shift(a, -W)                           # row i-1 (valid for i >= 1)
        down = shift(a, W)                          # row i+1 (valid for i <= H-2)
        r_m1 = jnp.where(first_row, down, up)       # reflected row (i-1)
        r_p1 = jnp.where(last_row, up, down)        # reflected row (i+1)
        taps = []
        for r in (r_m1, a, r_p1):                   # ki = 0, 1, 2
            left = shift(r, -1)                     # col j-1
            right = shift(r, 1)                     # col j+1
            taps.append(jnp.where(first_col, right, left))   # kj = 0 (reflected)
            taps.append(r)                                    # kj = 1
            taps.append(jnp.where(last_col, left, right))    # kj = 2 (reflected)
        patch = jnp.concatenate(taps, axis=0)       # (9*C, HW)
        return jnp.dot(w, patch, preferred_element_type=jnp.float32) + b

    # Small static unroll over the images of this grid block.
    for i in range(block_n):
        xi = x_ref[i]                                    # (Cin, HW)
        out10 = conv3x3_reflect(xi, w1, b1)              # (Cmid, HW)
        out11 = jnp.maximum(out10, 0.0)                  # act1 (ReLU)
        out20 = conv3x3_reflect(out11, w2, b2)
        out21 = jnp.maximum(out20, 0.0)                  # act2 (ReLU)
        out30 = conv3x3_reflect(out21, w3, b3)
        out31 = jnp.maximum(out30, 0.0)                  # act3 (ReLU) on branch 3
        # act3(cat(out10,out20,out30)) == cat(relu each); relu(out10)=out11 and
        # relu(out20)=out21 since act1/act2 are also ReLU in the default config.
        # last_conv (1x1) with the concat removed: three partial matmuls + add.
        out = (jnp.dot(wl1, out11, preferred_element_type=jnp.float32)
               + jnp.dot(wl2, out21, preferred_element_type=jnp.float32)
               + jnp.dot(wl3, out31, preferred_element_type=jnp.float32)
               + bl)
        # shortcut = 0 (use_shortcut=False); lane-dense (Cout, HW) store.
        o_ref[i] = out.astype(o_ref.dtype)


def _pick_block_n(n, max_block=8):
    for cand in range(min(n, max_block), 0, -1):
        if n % cand == 0:
            return cand
    return 1


def nested_inception_pallas(x, params, *, block_n=None):
    """NestedInception forward (default config). x: (N, Cin, H, W) float32 NCHW."""
    N, Cin, H, W = x.shape
    assert H >= 2 and W >= 2, "reflect padding (pad=1) requires H >= 2 and W >= 2"
    w1, b1, w2, b2, w3, b3, wl, bl = params   # PyTorch layouts (OIHW / (C,))
    Cmid = w1.shape[0]
    Cout = wl.shape[0]
    HW = H * W

    if block_n is None:
        block_n = _pick_block_n(N)
    assert N % block_n == 0

    # Lane-dense layout: flatten spatial into one (H*W)-wide lane axis (free,
    # contiguous reshape in XLA).
    x_flat = x.reshape(N, Cin, HW)

    # Repack 3x3 conv weights for channels-first im2col matmuls:
    #   w_m[o, (ki*3+kj)*C + c] = w[o, c, ki, kj]
    def pack3x3(w):
        o, c, kh, kw = w.shape
        return jnp.transpose(w, (0, 2, 3, 1)).reshape(o, kh * kw * c)

    w1m, w2m, w3m = pack3x3(w1), pack3x3(w2), pack3x3(w3)
    # Split the 1x1 weight to kill the channel concat.
    wl1, wl2, wl3 = wl[:, :Cmid], wl[:, Cmid:2 * Cmid], wl[:, 2 * Cmid:]
    b1c, b2c, b3c = b1.reshape(Cmid, 1), b2.reshape(Cmid, 1), b3.reshape(Cmid, 1)
    blc = bl.reshape(Cout, 1)

    # Column index of every flattened pixel (precomputed in XLA; avoids an
    # in-kernel integer remainder).
    colidx = (jnp.arange(HW, dtype=jnp.int32) % W).reshape(1, HW)

    def full_spec(a):
        nd = a.ndim
        return pl.BlockSpec(a.shape, lambda n: (0,) * nd)

    kernel = functools.partial(_nested_inception_kernel, H=H, W=W,
                               block_n=block_n)

    grid_spec = pltpu.PrefetchScalarGridSpec(
        num_scalar_prefetch=0,
        grid=(N // block_n,),
        in_specs=[
            full_spec(colidx),
            pl.BlockSpec((block_n, Cin, HW), lambda n: (n, 0, 0)),
            full_spec(w1m), full_spec(b1c),
            full_spec(w2m), full_spec(b2c),
            full_spec(w3m), full_spec(b3c),
            full_spec(wl1), full_spec(wl2), full_spec(wl3), full_spec(blc),
        ],
        out_specs=pl.BlockSpec((block_n, Cout, HW), lambda n: (n, 0, 0)),
    )

    out_flat = pl.pallas_call(
        kernel,
        out_shape=jax.ShapeDtypeStruct((N, Cout, HW), jnp.float32),
        grid_spec=grid_spec,
        compiler_params=pltpu.CompilerParams(
            dimension_semantics=("parallel",)),
    )(colidx, x_flat, w1m, b1c, w2m, b2c, w3m, b3c, wl1, wl2, wl3, blc)

    return out_flat.reshape(N, Cout, H, W)


def init_params(key, in_channels, out_channels, mid_channels):
    """PyTorch-style Conv2d init (uniform +/- 1/sqrt(fan_in)), PyTorch layouts."""
    ks = jax.random.split(key, 8)

    def conv_w(k, cout, cin, kh, kw):
        bound = 1.0 / np.sqrt(cin * kh * kw)
        return jax.random.uniform(k, (cout, cin, kh, kw), jnp.float32,
                                  -bound, bound)

    def conv_b(k, cout, cin, kh, kw):
        bound = 1.0 / np.sqrt(cin * kh * kw)
        return jax.random.uniform(k, (cout,), jnp.float32, -bound, bound)

    w1 = conv_w(ks[0], mid_channels, in_channels, 3, 3)
    b1 = conv_b(ks[1], mid_channels, in_channels, 3, 3)
    w2 = conv_w(ks[2], mid_channels, mid_channels, 3, 3)
    b2 = conv_b(ks[3], mid_channels, mid_channels, 3, 3)
    w3 = conv_w(ks[4], mid_channels, mid_channels, 3, 3)
    b3 = conv_b(ks[5], mid_channels, mid_channels, 3, 3)
    wl = conv_w(ks[6], out_channels, 3 * mid_channels, 1, 1)[:, :, 0, 0]
    bl = conv_b(ks[7], out_channels, 3 * mid_channels, 1, 1)
    return (w1, b1, w2, b2, w3, b3, wl, bl)


def ref_forward(x, params):
    """Pure-JAX reference of NestedInception.forward (default config), NCHW."""
    w1, b1, w2, b2, w3, b3, wl, bl = params

    def conv3x3_reflect(a, w, b):
        p = jnp.pad(a, ((0, 0), (0, 0), (1, 1), (1, 1)), mode="reflect")
        y = jax.lax.conv_general_dilated(
            p, w, window_strides=(1, 1), padding="VALID",
            dimension_numbers=("NCHW", "OIHW", "NCHW"),
            precision=jax.lax.Precision.HIGHEST)
        return y + b[None, :, None, None]

    out10 = conv3x3_reflect(x, w1, b1)
    out11 = jax.nn.relu(out10)
    out20 = conv3x3_reflect(out11, w2, b2)
    out21 = jax.nn.relu(out20)
    out30 = conv3x3_reflect(out21, w3, b3)
    cat = jax.nn.relu(jnp.concatenate([out10, out20, out30], axis=1))
    out = jnp.einsum("nchw,oc->nohw", cat, wl,
                     precision=jax.lax.Precision.HIGHEST)
    return out + bl[None, :, None, None]   # shortcut = 0 (use_shortcut=False)


if __name__ == "__main__":
    # Small shapes consistent with the module: mid_channels = in_channels // 4.
    N, Cin, H, W = 2, 8, 16, 16
    Cmid = Cin // 4        # 2
    Cout = Cin             # default out_channels = in_channels

    key = jax.random.PRNGKey(0)
    kx, kp = jax.random.split(key)
    x = jax.random.normal(kx, (N, Cin, H, W), jnp.float32)   # NCHW, like PyTorch
    params = init_params(kp, Cin, Cout, Cmid)

    out = jax.block_until_ready(nested_inception_pallas(x, params))
    ref = jax.block_until_ready(ref_forward(x, params))
    np.testing.assert_allclose(np.asarray(out), np.asarray(ref),
                               rtol=1e-4, atol=1e-4)

    print("KERNEL_OK")
</pallas_src>

<mosaic_0001>
module attributes {stable_mosaic.version = 11 : i64} {
  func.func @_nested_inception_kernel(%arg0: i32, %arg1: memref<1x256xi32, #tpu.memory_space<vmem>>, %arg2: memref<2x8x256xf32, #tpu.memory_space<vmem>>, %arg3: memref<2x72xf32, #tpu.memory_space<vmem>>, %arg4: memref<2x1xf32, #tpu.memory_space<vmem>>, %arg5: memref<2x18xf32, #tpu.memory_space<vmem>>, %arg6: memref<2x1xf32, #tpu.memory_space<vmem>>, %arg7: memref<2x18xf32, #tpu.memory_space<vmem>>, %arg8: memref<2x1xf32, #tpu.memory_space<vmem>>, %arg9: memref<8x2xf32, #tpu.memory_space<vmem>>, %arg10: memref<8x2xf32, #tpu.memory_space<vmem>>, %arg11: memref<8x2xf32, #tpu.memory_space<vmem>>, %arg12: memref<8x1xf32, #tpu.memory_space<vmem>>, %arg13: memref<2x8x256xf32, #tpu.memory_space<vmem>>) attributes {dimension_semantics = [#tpu.dimension_semantics<parallel>], iteration_bounds = array<i64: 1>, scalar_prefetch = 0 : i64, scratch_operands = 0 : i64, tpu.core_type = #tpu.core_type<tc>, window_params = [{pipeline_mode = #tpu.pipeline_mode<synchronous>, transform_indices = @transform_0, window_bounds = array<i64: 1, 256>}, {transform_indices = @transform_1, window_bounds = array<i64: 2, 8, 256>}, {pipeline_mode = #tpu.pipeline_mode<synchronous>, transform_indices = @transform_2, window_bounds = array<i64: 2, 72>}, {pipeline_mode = #tpu.pipeline_mode<synchronous>, transform_indices = @transform_3, window_bounds = array<i64: 2, 1>}, {pipeline_mode = #tpu.pipeline_mode<synchronous>, transform_indices = @transform_4, window_bounds = array<i64: 2, 18>}, {pipeline_mode = #tpu.pipeline_mode<synchronous>, transform_indices = @transform_5, window_bounds = array<i64: 2, 1>}, {pipeline_mode = #tpu.pipeline_mode<synchronous>, transform_indices = @transform_6, window_bounds = array<i64: 2, 18>}, {pipeline_mode = #tpu.pipeline_mode<synchronous>, transform_indices = @transform_7, window_bounds = array<i64: 2, 1>}, {pipeline_mode = #tpu.pipeline_mode<synchronous>, transform_indices = @transform_8, window_bounds = array<i64: 8, 2>}, {pipeline_mode = #tpu.pipeline_mode<synchronous>, transform_indices = @transform_9, window_bounds = array<i64: 8, 2>}, {pipeline_mode = #tpu.pipeline_mode<synchronous>, transform_indices = @transform_10, window_bounds = array<i64: 8, 2>}, {pipeline_mode = #tpu.pipeline_mode<synchronous>, transform_indices = @transform_11, window_bounds = array<i64: 8, 1>}, {transform_indices = @transform_12, window_bounds = array<i64: 2, 8, 256>}]} {
    %c0 = arith.constant 0 : index
    %c0_0 = arith.constant 0 : index
    %0 = vector.load %arg1[%c0, %c0_0] : memref<1x256xi32, #tpu.memory_space<vmem>>, vector<1x256xi32>
    %1 = tpu.iota {dimensions = array<i32: 1>} : vector<1x256xi32>
    %c0_i32 = arith.constant 0 : i32
    %2 = vector.broadcast %c0_i32 : i32 to vector<1x256xi32>
    %3 = arith.cmpi eq, %0, %2 : vector<1x256xi32>
    %c15_i32 = arith.constant 15 : i32
    %4 = vector.broadcast %c15_i32 : i32 to vector<1x256xi32>
    %5 = arith.cmpi eq, %0, %4 : vector<1x256xi32>
    %c16_i32 = arith.constant 16 : i32
    %6 = vector.broadcast %c16_i32 : i32 to vector<1x256xi32>
    %7 = arith.cmpi slt, %1, %6 : vector<1x256xi32>
    %c240_i32 = arith.constant 240 : i32
    %8 = vector.broadcast %c240_i32 : i32 to vector<1x256xi32>
    %9 = arith.cmpi sge, %1, %8 : vector<1x256xi32>
    %c0_1 = arith.constant 0 : index
    %c0_2 = arith.constant 0 : index
    %10 = vector.load %arg3[%c0_1, %c0_2] : memref<2x72xf32, #tpu.memory_space<vmem>>, vector<2x72xf32>
    %c0_3 = arith.constant 0 : index
    %c0_4 = arith.constant 0 : index
    %11 = vector.load %arg5[%c0_3, %c0_4] : memref<2x18xf32, #tpu.memory_space<vmem>>, vector<2x18xf32>
    %c0_5 = arith.constant 0 : index
    %c0_6 = arith.constant 0 : index
    %12 = vector.load %arg7[%c0_5, %c0_6] : memref<2x18xf32, #tpu.memory_space<vmem>>, vector<2x18xf32>
    %c0_7 = arith.constant 0 : index
    %c0_8 = arith.constant 0 : index
    %13 = vector.load %arg4[%c0_7, %c0_8] : memref<2x1xf32, #tpu.memory_space<vmem>>, vector<2x1xf32>
    %c0_9 = arith.constant 0 : index
    %c0_10 = arith.constant 0 : index
    %14 = vector.load %arg6[%c0_9, %c0_10] : memref<2x1xf32, #tpu.memory_space<vmem>>, vector<2x1xf32>
    %c0_11 = arith.constant 0 : index
    %c0_12 = arith.constant 0 : index
    %15 = vector.load %arg8[%c0_11, %c0_12] : memref<2x1xf32, #tpu.memory_space<vmem>>, vector<2x1xf32>
    %c0_13 = arith.constant 0 : index
    %c0_14 = arith.constant 0 : index
    %16 = vector.load %arg9[%c0_13, %c0_14] : memref<8x2xf32, #tpu.memory_space<vmem>>, vector<8x2xf32>
    %c0_15 = arith.constant 0 : index
    %c0_16 = arith.constant 0 : index
    %17 = vector.load %arg10[%c0_15, %c0_16] : memref<8x2xf32, #tpu.memory_space<vmem>>, vector<8x2xf32>
    %c0_17 = arith.constant 0 : index
    %c0_18 = arith.constant 0 : index
    %18 = vector.load %arg11[%c0_17, %c0_18] : memref<8x2xf32, #tpu.memory_space<vmem>>, vector<8x2xf32>
    %c0_19 = arith.constant 0 : index
    %c0_20 = arith.constant 0 : index
    %19 = vector.load %arg12[%c0_19, %c0_20] : memref<8x1xf32, #tpu.memory_space<vmem>>, vector<8x1xf32>
    %c0_21 = arith.constant 0 : index
    %c0_22 = arith.constant 0 : index
    %c0_23 = arith.constant 0 : index
    %20 = vector.load %arg2[%c0_21, %c0_22, %c0_23] : memref<2x8x256xf32, #tpu.memory_space<vmem>>, vector<1x8x256xf32>
    %21 = vector.shape_cast %20 : vector<1x8x256xf32> to vector<8x256xf32>
    %22 = vector.extract_strided_slice %21 {offsets = [0, 240], sizes = [8, 16], strides = [1, 1]} : vector<8x256xf32> to vector<8x16xf32>
    %23 = vector.extract_strided_slice %21 {offsets = [0, 0], sizes = [8, 240], strides = [1, 1]} : vector<8x256xf32> to vector<8x240xf32>
    %24 = tpu.concatenate %22, %23 in 1 : vector<8x16xf32>, vector<8x240xf32> -> vector<8x256xf32>
    %25 = vector.extract_strided_slice %21 {offsets = [0, 16], sizes = [8, 240], strides = [1, 1]} : vector<8x256xf32> to vector<8x240xf32>
    %26 = vector.extract_strided_slice %21 {offsets = [0, 0], sizes = [8, 16], strides = [1, 1]} : vector<8x256xf32> to vector<8x16xf32>
    %27 = tpu.concatenate %25, %26 in 1 : vector<8x240xf32>, vector<8x16xf32> -> vector<8x256xf32>
    %28 = vector.shape_cast %7 : vector<1x256xi1> to vector<1x256xi1>
    %29 = vector.broadcast %28 : vector<1x256xi1> to vector<8x256xi1>
    %30 = arith.select %29, %27, %24 : vector<8x256xi1>, vector<8x256xf32>
    %31 = vector.shape_cast %9 : vector<1x256xi1> to vector<1x256xi1>
    %32 = vector.broadcast %31 : vector<1x256xi1> to vector<8x256xi1>
    %33 = arith.select %32, %24, %27 : vector<8x256xi1>, vector<8x256xf32>
    %34 = vector.extract_strided_slice %30 {offsets = [0, 255], sizes = [8, 1], strides = [1, 1]} : vector<8x256xf32> to vector<8x1xf32>
    %35 = vector.extract_strided_slice %30 {offsets = [0, 0], sizes = [8, 255], strides = [1, 1]} : vector<8x256xf32> to vector<8x255xf32>
    %36 = tpu.concatenate %34, %35 in 1 : vector<8x1xf32>, vector<8x255xf32> -> vector<8x256xf32>
    %37 = vector.extract_strided_slice %30 {offsets = [0, 1], sizes = [8, 255], strides = [1, 1]} : vector<8x256xf32> to vector<8x255xf32>
    %38 = vector.extract_strided_slice %30 {offsets = [0, 0], sizes = [8, 1], strides = [1, 1]} : vector<8x256xf32> to vector<8x1xf32>
    %39 = tpu.concatenate %37, %38 in 1 : vector<8x255xf32>, vector<8x1xf32> -> vector<8x256xf32>
    %40 = vector.shape_cast %3 : vector<1x256xi1> to vector<1x256xi1>
    %41 = vector.broadcast %40 : vector<1x256xi1> to vector<8x256xi1>
    %42 = arith.select %41, %39, %36 : vector<8x256xi1>, vector<8x256xf32>
    %43 = vector.shape_cast %5 : vector<1x256xi1> to vector<1x256xi1>
    %44 = vector.broadcast %43 : vector<1x256xi1> to vector<8x256xi1>
    %45 = arith.select %44, %36, %39 : vector<8x256xi1>, vector<8x256xf32>
    %46 = vector.extract_strided_slice %21 {offsets = [0, 255], sizes = [8, 1], strides = [1, 1]} : vector<8x256xf32> to vector<8x1xf32>
    %47 = vector.extract_strided_slice %21 {offsets = [0, 0], sizes = [8, 255], strides = [1, 1]} : vector<8x256xf32> to vector<8x255xf32>
    %48 = tpu.concatenate %46, %47 in 1 : vector<8x1xf32>, vector<8x255xf32> -> vector<8x256xf32>
    %49 = vector.extract_strided_slice %21 {offsets = [0, 1], sizes = [8, 255], strides = [1, 1]} : vector<8x256xf32> to vector<8x255xf32>
    %50 = vector.extract_strided_slice %21 {offsets = [0, 0], sizes = [8, 1], strides = [1, 1]} : vector<8x256xf32> to vector<8x1xf32>
    %51 = tpu.concatenate %49, %50 in 1 : vector<8x255xf32>, vector<8x1xf32> -> vector<8x256xf32>
    %52 = vector.shape_cast %3 : vector<1x256xi1> to vector<1x256xi1>
    %53 = vector.broadcast %52 : vector<1x256xi1> to vector<8x256xi1>
    %54 = arith.select %53, %51, %48 : vector<8x256xi1>, vector<8x256xf32>
    %55 = vector.shape_cast %5 : vector<1x256xi1> to vector<1x256xi1>
    %56 = vector.broadcast %55 : vector<1x256xi1> to vector<8x256xi1>
    %57 = arith.select %56, %48, %51 : vector<8x256xi1>, vector<8x256xf32>
    %58 = vector.extract_strided_slice %33 {offsets = [0, 255], sizes = [8, 1], strides = [1, 1]} : vector<8x256xf32> to vector<8x1xf32>
    %59 = vector.extract_strided_slice %33 {offsets = [0, 0], sizes = [8, 255], strides = [1, 1]} : vector<8x256xf32> to vector<8x255xf32>
    %60 = tpu.concatenate %58, %59 in 1 : vector<8x1xf32>, vector<8x255xf32> -> vector<8x256xf32>
    %61 = vector.extract_strided_slice %33 {offsets = [0, 1], sizes = [8, 255], strides = [1, 1]} : vector<8x256xf32> to vector<8x255xf32>
    %62 = vector.extract_strided_slice %33 {offsets = [0, 0], sizes = [8, 1], strides = [1, 1]} : vector<8x256xf32> to vector<8x1xf32>
    %63 = tpu.concatenate %61, %62 in 1 : vector<8x255xf32>, vector<8x1xf32> -> vector<8x256xf32>
    %64 = vector.shape_cast %3 : vector<1x256xi1> to vector<1x256xi1>
    %65 = vector.broadcast %64 : vector<1x256xi1> to vector<8x256xi1>
    %66 = arith.select %65, %63, %60 : vector<8x256xi1>, vector<8x256xf32>
    %67 = vector.shape_cast %5 : vector<1x256xi1> to vector<1x256xi1>
    %68 = vector.broadcast %67 : vector<1x256xi1> to vector<8x256xi1>
    %69 = arith.select %68, %60, %63 : vector<8x256xi1>, vector<8x256xf32>
    %70 = tpu.concatenate %42, %30, %45, %54, %21, %57, %66, %33, %69 in 0 : vector<8x256xf32>, vector<8x256xf32>, vector<8x256xf32>, vector<8x256xf32>, vector<8x256xf32>, vector<8x256xf32>, vector<8x256xf32>, vector<8x256xf32>, vector<8x256xf32> -> vector<72x256xf32>
    %cst = arith.constant dense<0.000000e+00> : vector<2x256xf32>
    %71 = tpu.matmul %10, %70, %cst {dimension_numbers = #tpu.dot_dimension_numbers<[1], [0], [0], [1], [0, 0, 1, 1], [], []>} : vector<2x72xf32>, vector<72x256xf32>, vector<2x256xf32> -> vector<2x256xf32>
    %72 = vector.broadcast %13 : vector<2x1xf32> to vector<2x256xf32>
    %73 = arith.addf %71, %72 : vector<2x256xf32>
    %cst_24 = arith.constant 0.000000e+00 : f32
    %74 = vector.broadcast %cst_24 : f32 to vector<2x256xf32>
    %75 = arith.maximumf %73, %74 : vector<2x256xf32>
    %76 = vector.extract_strided_slice %75 {offsets = [0, 240], sizes = [2, 16], strides = [1, 1]} : vector<2x256xf32> to vector<2x16xf32>
    %77 = vector.extract_strided_slice %75 {offsets = [0, 0], sizes = [2, 240], strides = [1, 1]} : vector<2x256xf32> to vector<2x240xf32>
    %78 = tpu.concatenate %76, %77 in 1 : vector<2x16xf32>, vector<2x240xf32> -> vector<2x256xf32>
    %79 = vector.extract_strided_slice %75 {offsets = [0, 16], sizes = [2, 240], strides = [1, 1]} : vector<2x256xf32> to vector<2x240xf32>
    %80 = vector.extract_strided_slice %75 {offsets = [0, 0], sizes = [2, 16], strides = [1, 1]} : vector<2x256xf32> to vector<2x16xf32>
    %81 = tpu.concatenate %79, %80 in 1 : vector<2x240xf32>, vector<2x16xf32> -> vector<2x256xf32>
    %82 = vector.shape_cast %7 : vector<1x256xi1> to vector<1x256xi1>
    %83 = vector.broadcast %82 : vector<1x256xi1> to vector<2x256xi1>
    %84 = arith.select %83, %81, %78 : vector<2x256xi1>, vector<2x256xf32>
    %85 = vector.shape_cast %9 : vector<1x256xi1> to vector<1x256xi1>
    %86 = vector.broadcast %85 : vector<1x256xi1> to vector<2x256xi1>
    %87 = arith.select %86, %78, %81 : vector<2x256xi1>, vector<2x256xf32>
    %88 = vector.extract_strided_slice %84 {offsets = [0, 255], sizes = [2, 1], strides = [1, 1]} : vector<2x256xf32> to vector<2x1xf32>
    %89 = vector.extract_strided_slice %84 {offsets = [0, 0], sizes = [2, 255], strides = [1, 1]} : vector<2x256xf32> to vector<2x255xf32>
    %90 = tpu.concatenate %88, %89 in 1 : vector<2x1xf32>, vector<2x255xf32> -> vector<2x256xf32>
    %91 = vector.extract_strided_slice %84 {offsets = [0, 1], sizes = [2, 255], strides = [1, 1]} : vector<2x256xf32> to vector<2x255xf32>
    %92 = vector.extract_strided_slice %84 {offsets = [0, 0], sizes = [2, 1], strides = [1, 1]} : vector<2x256xf32> to vector<2x1xf32>
    %93 = tpu.concatenate %91, %92 in 1 : vector<2x255xf32>, vector<2x1xf32> -> vector<2x256xf32>
    %94 = vector.shape_cast %3 : vector<1x256xi1> to vector<1x256xi1>
    %95 = vector.broadcast %94 : vector<1x256xi1> to vector<2x256xi1>
    %96 = arith.select %95, %93, %90 : vector<2x256xi1>, vector<2x256xf32>
    %97 = vector.shape_cast %5 : vector<1x256xi1> to vector<1x256xi1>
    %98 = vector.broadcast %97 : vector<1x256xi1> to vector<2x256xi1>
    %99 = arith.select %98, %90, %93 : vector<2x256xi1>, vector<2x256xf32>
    %100 = vector.extract_strided_slice %75 {offsets = [0, 255], sizes = [2, 1], strides = [1, 1]} : vector<2x256xf32> to vector<2x1xf32>
    %101 = vector.extract_strided_slice %75 {offsets = [0, 0], sizes = [2, 255], strides = [1, 1]} : vector<2x256xf32> to vector<2x255xf32>
    %102 = tpu.concatenate %100, %101 in 1 : vector<2x1xf32>, vector<2x255xf32> -> vector<2x256xf32>
    %103 = vector.extract_strided_slice %75 {offsets = [0, 1], sizes = [2, 255], strides = [1, 1]} : vector<2x256xf32> to vector<2x255xf32>
    %104 = vector.extract_strided_slice %75 {offsets = [0, 0], sizes = [2, 1], strides = [1, 1]} : vector<2x256xf32> to vector<2x1xf32>
    %105 = tpu.concatenate %103, %104 in 1 : vector<2x255xf32>, vector<2x1xf32> -> vector<2x256xf32>
    %106 = vector.shape_cast %3 : vector<1x256xi1> to vector<1x256xi1>
    %107 = vector.broadcast %106 : vector<1x256xi1> to vector<2x256xi1>
    %108 = arith.select %107, %105, %102 : vector<2x256xi1>, vector<2x256xf32>
    %109 = vector.shape_cast %5 : vector<1x256xi1> to vector<1x256xi1>
    %110 = vector.broadcast %109 : vector<1x256xi1> to vector<2x256xi1>
    %111 = arith.select %110, %102, %105 : vector<2x256xi1>, vector<2x256xf32>
    %112 = vector.extract_strided_slice %87 {offsets = [0, 255], sizes = [2, 1], strides = [1, 1]} : vector<2x256xf32> to vector<2x1xf32>
    %113 = vector.extract_strided_slice %87 {offsets = [0, 0], sizes = [2, 255], strides = [1, 1]} : vector<2x256xf32> to vector<2x255xf32>
    %114 = tpu.concatenate %112, %113 in 1 : vector<2x1xf32>, vector<2x255xf32> -> vector<2x256xf32>
    %115 = vector.extract_strided_slice %87 {offsets = [0, 1], sizes = [2, 255], strides = [1, 1]} : vector<2x256xf32> to vector<2x255xf32>
    %116 = vector.extract_strided_slice %87 {offsets = [0, 0], sizes = [2, 1], strides = [1, 1]} : vector<2x256xf32> to vector<2x1xf32>
    %117 = tpu.concatenate %115, %116 in 1 : vector<2x255xf32>, vector<2x1xf32> -> vector<2x256xf32>
    %118 = vector.shape_cast %3 : vector<1x256xi1> to vector<1x256xi1>
    %119 = vector.broadcast %118 : vector<1x256xi1> to vector<2x256xi1>
    %120 = arith.select %119, %117, %114 : vector<2x256xi1>, vector<2x256xf32>
    %121 = vector.shape_cast %5 : vector<1x256xi1> to vector<1x256xi1>
    %122 = vector.broadcast %121 : vector<1x256xi1> to vector<2x256xi1>
    %123 = arith.select %122, %114, %117 : vector<2x256xi1>, vector<2x256xf32>
    %124 = tpu.concatenate %96, %84, %99, %108, %75, %111, %120, %87, %123 in 0 : vector<2x256xf32>, vector<2x256xf32>, vector<2x256xf32>, vector<2x256xf32>, vector<2x256xf32>, vector<2x256xf32>, vector<2x256xf32>, vector<2x256xf32>, vector<2x256xf32> -> vector<18x256xf32>
    %cst_25 = arith.constant dense<0.000000e+00> : vector<2x256xf32>
    %125 = tpu.matmul %11, %124, %cst_25 {dimension_numbers = #tpu.dot_dimension_numbers<[1], [0], [0], [1], [0, 0, 1, 1], [], []>} : vector<2x18xf32>, vector<18x256xf32>, vector<2x256xf32> -> vector<2x256xf32>
    %126 = vector.broadcast %14 : vector<2x1xf32> to vector<2x256xf32>
    %127 = arith.addf %125, %126 : vector<2x256xf32>
    %cst_26 = arith.constant 0.000000e+00 : f32
    %128 = vector.broadcast %cst_26 : f32 to vector<2x256xf32>
    %129 = arith.maximumf %127, %128 : vector<2x256xf32>
    %130 = vector.extract_strided_slice %129 {offsets = [0, 240], sizes = [2, 16], strides = [1, 1]} : vector<2x256xf32> to vector<2x16xf32>
    %131 = vector.extract_strided_slice %129 {offsets = [0, 0], sizes = [2, 240], strides = [1, 1]} : vector<2x256xf32> to vector<2x240xf32>
    %132 = tpu.concatenate %130, %131 in 1 : vector<2x16xf32>, vector<2x240xf32> -> vector<2x256xf32>
    %133 = vector.extract_strided_slice %129 {offsets = [0, 16], sizes = [2, 240], strides = [1, 1]} : vector<2x256xf32> to vector<2x240xf32>
    %134 = vector.extract_strided_slice %129 {offsets = [0, 0], sizes = [2, 16], strides = [1, 1]} : vector<2x256xf32> to vector<2x16xf32>
    %135 = tpu.concatenate %133, %134 in 1 : vector<2x240xf32>, vector<2x16xf32> -> vector<2x256xf32>
    %136 = vector.shape_cast %7 : vector<1x256xi1> to vector<1x256xi1>
    %137 = vector.broadcast %136 : vector<1x256xi1> to vector<2x256xi1>
    %138 = arith.select %137, %135, %132 : vector<2x256xi1>, vector<2x256xf32>
    %139 = vector.shape_cast %9 : vector<1x256xi1> to vector<1x256xi1>
    %140 = vector.broadcast %139 : vector<1x256xi1> to vector<2x256xi1>
    %141 = arith.select %140, %132, %135 : vector<2x256xi1>, vector<2x256xf32>
    %142 = vector.extract_strided_slice %138 {offsets = [0, 255], sizes = [2, 1], strides = [1, 1]} : vector<2x256xf32> to vector<2x1xf32>
    %143 = vector.extract_strided_slice %138 {offsets = [0, 0], sizes = [2, 255], strides = [1, 1]} : vector<2x256xf32> to vector<2x255xf32>
    %144 = tpu.concatenate %142, %143 in 1 : vector<2x1xf32>, vector<2x255xf32> -> vector<2x256xf32>
    %145 = vector.extract_strided_slice %138 {offsets = [0, 1], sizes = [2, 255], strides = [1, 1]} : vector<2x256xf32> to vector<2x255xf32>
    %146 = vector.extract_strided_slice %138 {offsets = [0, 0], sizes = [2, 1], strides = [1, 1]} : vector<2x256xf32> to vector<2x1xf32>
    %147 = tpu.concatenate %145, %146 in 1 : vector<2x255xf32>, vector<2x1xf32> -> vector<2x256xf32>
    %148 = vector.shape_cast %3 : vector<1x256xi1> to vector<1x256xi1>
    %149 = vector.broadcast %148 : vector<1x256xi1> to vector<2x256xi1>
    %150 = arith.select %149, %147, %144 : vector<2x256xi1>, vector<2x256xf32>
    %151 = vector.shape_cast %5 : vector<1x256xi1> to vector<1x256xi1>
    %152 = vector.broadcast %151 : vector<1x256xi1> to vector<2x256xi1>
    %153 = arith.select %152, %144, %147 : vector<2x256xi1>, vector<2x256xf32>
    %154 = vector.extract_strided_slice %129 {offsets = [0, 255], sizes = [2, 1], strides = [1, 1]} : vector<2x256xf32> to vector<2x1xf32>
    %155 = vector.extract_strided_slice %129 {offsets = [0, 0], sizes = [2, 255], strides = [1, 1]} : vector<2x256xf32> to vector<2x255xf32>
    %156 = tpu.concatenate %154, %155 in 1 : vector<2x1xf32>, vector<2x255xf32> -> vector<2x256xf32>
    %157 = vector.extract_strided_slice %129 {offsets = [0, 1], sizes = [2, 255], strides = [1, 1]} : vector<2x256xf32> to vector<2x255xf32>
    %158 = vector.extract_strided_slice %129 {offsets = [0, 0], sizes = [2, 1], strides = [1, 1]} : vector<2x256xf32> to vector<2x1xf32>
    %159 = tpu.concatenate %157, %158 in 1 : vector<2x255xf32>, vector<2x1xf32> -> vector<2x256xf32>
    %160 = vector.shape_cast %3 : vector<1x256xi1> to vector<1x256xi1>
    %161 = vector.broadcast %160 : vector<1x256xi1> to vector<2x256xi1>
    %162 = arith.select %161, %159, %156 : vector<2x256xi1>, vector<2x256xf32>
    %163 = vector.shape_cast %5 : vector<1x256xi1> to vector<1x256xi1>
    %164 = vector.broadcast %163 : vector<1x256xi1> to vector<2x256xi1>
    %165 = arith.select %164, %156, %159 : vector<2x256xi1>, vector<2x256xf32>
    %166 = vector.extract_strided_slice %141 {offsets = [0, 255], sizes = [2, 1], strides = [1, 1]} : vector<2x256xf32> to vector<2x1xf32>
    %167 = vector.extract_strided_slice %141 {offsets = [0, 0], sizes = [2, 255], strides = [1, 1]} : vector<2x256xf32> to vector<2x255xf32>
    %168 = tpu.concatenate %166, %167 in 1 : vector<2x1xf32>, vector<2x255xf32> -> vector<2x256xf32>
    %169 = vector.extract_strided_slice %141 {offsets = [0, 1], sizes = [2, 255], strides = [1, 1]} : vector<2x256xf32> to vector<2x255xf32>
    %170 = vector.extract_strided_slice %141 {offsets = [0, 0], sizes = [2, 1], strides = [1, 1]} : vector<2x256xf32> to vector<2x1xf32>
    %171 = tpu.concatenate %169, %170 in 1 : vector<2x255xf32>, vector<2x1xf32> -> vector<2x256xf32>
    %172 = vector.shape_cast %3 : vector<1x256xi1> to vector<1x256xi1>
    %173 = vector.broadcast %172 : vector<1x256xi1> to vector<2x256xi1>
    %174 = arith.select %173, %171, %168 : vector<2x256xi1>, vector<2x256xf32>
    %175 = vector.shape_cast %5 : vector<1x256xi1> to vector<1x256xi1>
    %176 = vector.broadcast %175 : vector<1x256xi1> to vector<2x256xi1>
    %177 = arith.select %176, %168, %171 : vector<2x256xi1>, vector<2x256xf32>
    %178 = tpu.concatenate %150, %138, %153, %162, %129, %165, %174, %141, %177 in 0 : vector<2x256xf32>, vector<2x256xf32>, vector<2x256xf32>, vector<2x256xf32>, vector<2x256xf32>, vector<2x256xf32>, vector<2x256xf32>, vector<2x256xf32>, vector<2x256xf32> -> vector<18x256xf32>
    %cst_27 = arith.constant dense<0.000000e+00> : vector<2x256xf32>
    %179 = tpu.matmul %12, %178, %cst_27 {dimension_numbers = #tpu.dot_dimension_numbers<[1], [0], [0], [1], [0, 0, 1, 1], [], []>} : vector<2x18xf32>, vector<18x256xf32>, vector<2x256xf32> -> vector<2x256xf32>
    %180 = vector.broadcast %15 : vector<2x1xf32> to vector<2x256xf32>
    %181 = arith.addf %179, %180 : vector<2x256xf32>
    %cst_28 = arith.constant 0.000000e+00 : f32
    %182 = vector.broadcast %cst_28 : f32 to vector<2x256xf32>
    %183 = arith.maximumf %181, %182 : vector<2x256xf32>
    %cst_29 = arith.constant dense<0.000000e+00> : vector<8x256xf32>
    %184 = tpu.matmul %16, %75, %cst_29 {dimension_numbers = #tpu.dot_dimension_numbers<[1], [0], [0], [1], [0, 0, 1, 1], [], []>} : vector<8x2xf32>, vector<2x256xf32>, vector<8x256xf32> -> vector<8x256xf32>
    %cst_30 = arith.constant dense<0.000000e+00> : vector<8x256xf32>
    %185 = tpu.matmul %17, %129, %cst_30 {dimension_numbers = #tpu.dot_dimension_numbers<[1], [0], [0], [1], [0, 0, 1, 1], [], []>} : vector<8x2xf32>, vector<2x256xf32>, vector<8x256xf32> -> vector<8x256xf32>
    %186 = arith.addf %184, %185 : vector<8x256xf32>
    %cst_31 = arith.constant dense<0.000000e+00> : vector<8x256xf32>
    %187 = tpu.matmul %18, %183, %cst_31 {dimension_numbers = #tpu.dot_dimension_numbers<[1], [0], [0], [1], [0, 0, 1, 1], [], []>} : vector<8x2xf32>, vector<2x256xf32>, vector<8x256xf32> -> vector<8x256xf32>
    %188 = arith.addf %186, %187 : vector<8x256xf32>
    %189 = vector.broadcast %19 : vector<8x1xf32> to vector<8x256xf32>
    %190 = arith.addf %188, %189 : vector<8x256xf32>
    %c0_32 = arith.constant 0 : index
    %c0_33 = arith.constant 0 : index
    %c0_34 = arith.constant 0 : index
    %191 = vector.load %arg13[%c0_32, %c0_33, %c0_34] : memref<2x8x256xf32, #tpu.memory_space<vmem>>, vector<1x8x256xf32>
    %192 = vector.shape_cast %191 : vector<1x8x256xf32> to vector<8x256xf32>
    %193 = vector.shape_cast %190 : vector<8x256xf32> to vector<1x8x256xf32>
    tpu.vector_store %arg13[%c0_32, %c0_33, %c0_34], %193 {strides = array<i32>} : memref<2x8x256xf32, #tpu.memory_space<vmem>>, vector<1x8x256xf32>,
    %c1 = arith.constant 1 : index
    %c0_35 = arith.constant 0 : index
    %c0_36 = arith.constant 0 : index
    %194 = vector.load %arg2[%c1, %c0_35, %c0_36] : memref<2x8x256xf32, #tpu.memory_space<vmem>>, vector<1x8x256xf32>
    %195 = vector.shape_cast %194 : vector<1x8x256xf32> to vector<8x256xf32>
    %196 = vector.extract_strided_slice %195 {offsets = [0, 240], sizes = [8, 16], strides = [1, 1]} : vector<8x256xf32> to vector<8x16xf32>
    %197 = vector.extract_strided_slice %195 {offsets = [0, 0], sizes = [8, 240], strides = [1, 1]} : vector<8x256xf32> to vector<8x240xf32>
    %198 = tpu.concatenate %196, %197 in 1 : vector<8x16xf32>, vector<8x240xf32> -> vector<8x256xf32>
    %199 = vector.extract_strided_slice %195 {offsets = [0, 16], sizes = [8, 240], strides = [1, 1]} : vector<8x256xf32> to vector<8x240xf32>
    %200 = vector.extract_strided_slice %195 {offsets = [0, 0], sizes = [8, 16], strides = [1, 1]} : vector<8x256xf32> to vector<8x16xf32>
    %201 = tpu.concatenate %199, %200 in 1 : vector<8x240xf32>, vector<8x16xf32> -> vector<8x256xf32>
    %202 = vector.shape_cast %7 : vector<1x256xi1> to vector<1x256xi1>
    %203 = vector.broadcast %202 : vector<1x256xi1> to vector<8x256xi1>
    %204 = arith.select %203, %201, %198 : vector<8x256xi1>, vector<8x256xf32>
    %205 = vector.shape_cast %9 : vector<1x256xi1> to vector<1x256xi1>
    %206 = vector.broadcast %205 : vector<1x256xi1> to vector<8x256xi1>
    %207 = arith.select %206, %198, %201 : vector<8x256xi1>, vector<8x256xf32>
    %208 = vector.extract_strided_slice %204 {offsets = [0, 255], sizes = [8, 1], strides = [1, 1]} : vector<8x256xf32> to vector<8x1xf32>
    %209 = vector.extract_strided_slice %204 {offsets = [0, 0], sizes = [8, 255], strides = [1, 1]} : vector<8x256xf32> to vector<8x255xf32>
    %210 = tpu.concatenate %208, %209 in 1 : vector<8x1xf32>, vector<8x255xf32> -> vector<8x256xf32>
    %211 = vector.extract_strided_slice %204 {offsets = [0, 1], sizes = [8, 255], strides = [1, 1]} : vector<8x256xf32> to vector<8x255xf32>
    %212 = vector.extract_strided_slice %204 {offsets = [0, 0], sizes = [8, 1], strides = [1, 1]} : vector<8x256xf32> to vector<8x1xf32>
    %213 = tpu.concatenate %211, %212 in 1 : vector<8x255xf32>, vector<8x1xf32> -> vector<8x256xf32>
    %214 = vector.shape_cast %3 : vector<1x256xi1> to vector<1x256xi1>
    %215 = vector.broadcast %214 : vector<1x256xi1> to vector<8x256xi1>
    %216 = arith.select %215, %213, %210 : vector<8x256xi1>, vector<8x256xf32>
    %217 = vector.shape_cast %5 : vector<1x256xi1> to vector<1x256xi1>
    %218 = vector.broadcast %217 : vector<1x256xi1> to vector<8x256xi1>
    %219 = arith.select %218, %210, %213 : vector<8x256xi1>, vector<8x256xf32>
    %220 = vector.extract_strided_slice %195 {offsets = [0, 255], sizes = [8, 1], strides = [1, 1]} : vector<8x256xf32> to vector<8x1xf32>
    %221 = vector.extract_strided_slice %195 {offsets = [0, 0], sizes = [8, 255], strides = [1, 1]} : vector<8x256xf32> to vector<8x255xf32>
    %222 = tpu.concatenate %220, %221 in 1 : vector<8x1xf32>, vector<8x255xf32> -> vector<8x256xf32>
    %223 = vector.extract_strided_slice %195 {offsets = [0, 1], sizes = [8, 255], strides = [1, 1]} : vector<8x256xf32> to vector<8x255xf32>
    %224 = vector.extract_strided_slice %195 {offsets = [0, 0], sizes = [8, 1], strides = [1, 1]} : vector<8x256xf32> to vector<8x1xf32>
    %225 = tpu.concatenate %223, %224 in 1 : vector<8x255xf32>, vector<8x1xf32> -> vector<8x256xf32>
    %226 = vector.shape_cast %3 : vector<1x256xi1> to vector<1x256xi1>
    %227 = vector.broadcast %226 : vector<1x256xi1> to vector<8x256xi1>
    %228 = arith.select %227, %225, %222 : vector<8x256xi1>, vector<8x256xf32>
    %229 = vector.shape_cast %5 : vector<1x256xi1> to vector<1x256xi1>
    %230 = vector.broadcast %229 : vector<1x256xi1> to vector<8x256xi1>
    %231 = arith.select %230, %222, %225 : vector<8x256xi1>, vector<8x256xf32>
    %232 = vector.extract_strided_slice %207 {offsets = [0, 255], sizes = [8, 1], strides = [1, 1]} : vector<8x256xf32> to vector<8x1xf32>
    %233 = vector.extract_strided_slice %207 {offsets = [0, 0], sizes = [8, 255], strides = [1, 1]} : vector<8x256xf32> to vector<8x255xf32>
    %234 = tpu.concatenate %232, %233 in 1 : vector<8x1xf32>, vector<8x255xf32> -> vector<8x256xf32>
    %235 = vector.extract_strided_slice %207 {offsets = [0, 1], sizes = [8, 255], strides = [1, 1]} : vector<8x256xf32> to vector<8x255xf32>
    %236 = vector.extract_strided_slice %207 {offsets = [0, 0], sizes = [8, 1], strides = [1, 1]} : vector<8x256xf32> to vector<8x1xf32>
    %237 = tpu.concatenate %235, %236 in 1 : vector<8x255xf32>, vector<8x1xf32> -> vector<8x256xf32>
    %238 = vector.shape_cast %3 : vector<1x256xi1> to vector<1x256xi1>
    %239 = vector.broadcast %238 : vector<1x256xi1> to vector<8x256xi1>
    %240 = arith.select %239, %237, %234 : vector<8x256xi1>, vector<8x256xf32>
    %241 = vector.shape_cast %5 : vector<1x256xi1> to vector<1x256xi1>
    %242 = vector.broadcast %241 : vector<1x256xi1> to vector<8x256xi1>
    %243 = arith.select %242, %234, %237 : vector<8x256xi1>, vector<8x256xf32>
    %244 = tpu.concatenate %216, %204, %219, %228, %195, %231, %240, %207, %243 in 0 : vector<8x256xf32>, vector<8x256xf32>, vector<8x256xf32>, vector<8x256xf32>, vector<8x256xf32>, vector<8x256xf32>, vector<8x256xf32>, vector<8x256xf32>, vector<8x256xf32> -> vector<72x256xf32>
    %cst_37 = arith.constant dense<0.000000e+00> : vector<2x256xf32>
    %245 = tpu.matmul %10, %244, %cst_37 {dimension_numbers = #tpu.dot_dimension_numbers<[1], [0], [0], [1], [0, 0, 1, 1], [], []>} : vector<2x72xf32>, vector<72x256xf32>, vector<2x256xf32> -> vector<2x256xf32>
    %246 = vector.broadcast %13 : vector<2x1xf32> to vector<2x256xf32>
    %247 = arith.addf %245, %246 : vector<2x256xf32>
    %cst_38 = arith.constant 0.000000e+00 : f32
    %248 = vector.broadcast %cst_38 : f32 to vector<2x256xf32>
    %249 = arith.maximumf %247, %248 : vector<2x256xf32>
    %250 = vector.extract_strided_slice %249 {offsets = [0, 240], sizes = [2, 16], strides = [1, 1]} : vector<2x256xf32> to vector<2x16xf32>
    %251 = vector.extract_strided_slice %249 {offsets = [0, 0], sizes = [2, 240], strides = [1, 1]} : vector<2x256xf32> to vector<2x240xf32>
    %252 = tpu.concatenate %250, %251 in 1 : vector<2x16xf32>, vector<2x240xf32> -> vector<2x256xf32>
    %253 = vector.extract_strided_slice %249 {offsets = [0, 16], sizes = [2, 240], strides = [1, 1]} : vector<2x256xf32> to vector<2x240xf32>
    %254 = vector.extract_strided_slice %249 {offsets = [0, 0], sizes = [2, 16], strides = [1, 1]} : vector<2x256xf32> to vector<2x16xf32>
    %255 = tpu.concatenate %253, %254 in 1 : vector<2x240xf32>, vector<2x16xf32> -> vector<2x256xf32>
    %256 = vector.shape_cast %7 : vector<1x256xi1> to vector<1x256xi1>
    %257 = vector.broadcast %256 : vector<1x256xi1> to vector<2x256xi1>
    %258 = arith.select %257, %255, %252 : vector<2x256xi1>, vector<2x256xf32>
    %259 = vector.shape_cast %9 : vector<1x256xi1> to vector<1x256xi1>
    %260 = vector.broadcast %259 : vector<1x256xi1> to vector<2x256xi1>
    %261 = arith.select %260, %252, %255 : vector<2x256xi1>, vector<2x256xf32>
    %262 = vector.extract_strided_slice %258 {offsets = [0, 255], sizes = [2, 1], strides = [1, 1]} : vector<2x256xf32> to vector<2x1xf32>
    %263 = vector.extract_strided_slice %258 {offsets = [0, 0], sizes = [2, 255], strides = [1, 1]} : vector<2x256xf32> to vector<2x255xf32>
    %264 = tpu.concatenate %262, %263 in 1 : vector<2x1xf32>, vector<2x255xf32> -> vector<2x256xf32>
    %265 = vector.extract_strided_slice %258 {offsets = [0, 1], sizes = [2, 255], strides = [1, 1]} : vector<2x256xf32> to vector<2x255xf32>
    %266 = vector.extract_strided_slice %258 {offsets = [0, 0], sizes = [2, 1], strides = [1, 1]} : vector<2x256xf32> to vector<2x1xf32>
    %267 = tpu.concatenate %265, %266 in 1 : vector<2x255xf32>, vector<2x1xf32> -> vector<2x256xf32>
    %268 = vector.shape_cast %3 : vector<1x256xi1> to vector<1x256xi1>
    %269 = vector.broadcast %268 : vector<1x256xi1> to vector<2x256xi1>
    %270 = arith.select %269, %267, %264 : vector<2x256xi1>, vector<2x256xf32>
    %271 = vector.shape_cast %5 : vector<1x256xi1> to vector<1x256xi1>
    %272 = vector.broadcast %271 : vector<1x256xi1> to vector<2x256xi1>
    %273 = arith.select %272, %264, %267 : vector<2x256xi1>, vector<2x256xf32>
    %274 = vector.extract_strided_slice %249 {offsets = [0, 255], sizes = [2, 1], strides = [1, 1]} : vector<2x256xf32> to vector<2x1xf32>
    %275 = vector.extract_strided_slice %249 {offsets = [0, 0], sizes = [2, 255], strides = [1, 1]} : vector<2x256xf32> to vector<2x255xf32>
    %276 = tpu.concatenate %274, %275 in 1 : vector<2x1xf32>, vector<2x255xf32> -> vector<2x256xf32>
    %277 = vector.extract_strided_slice %249 {offsets = [0, 1], sizes = [2, 255], strides = [1, 1]} : vector<2x256xf32> to vector<2x255xf32>
    %278 = vector.extract_strided_slice %249 {offsets = [0, 0], sizes = [2, 1], strides = [1, 1]} : vector<2x256xf32> to vector<2x1xf32>
    %279 = tpu.concatenate %277, %278 in 1 : vector<2x255xf32>, vector<2x1xf32> -> vector<2x256xf32>
    %280 = vector.shape_cast %3 : vector<1x256xi1> to vector<1x256xi1>
    %281 = vector.broadcast %280 : vector<1x256xi1> to vector<2x256xi1>
    %282 = arith.select %281, %279, %276 : vector<2x256xi1>, vector<2x256xf32>
    %283 = vector.shape_cast %5 : vector<1x256xi1> to vector<1x256xi1>
    %284 = vector.broadcast %283 : vector<1x256xi1> to vector<2x256xi1>
    %285 = arith.select %284, %276, %279 : vector<2x256xi1>, vector<2x256xf32>
    %286 = vector.extract_strided_slice %261 {offsets = [0, 255], sizes = [2, 1], strides = [1, 1]} : vector<2x256xf32> to vector<2x1xf32>
    %287 = vector.extract_strided_slice %261 {offsets = [0, 0], sizes = [2, 255], strides = [1, 1]} : vector<2x256xf32> to vector<2x255xf32>
    %288 = tpu.concatenate %286, %287 in 1 : vector<2x1xf32>, vector<2x255xf32> -> vector<2x256xf32>
    %289 = vector.extract_strided_slice %261 {offsets = [0, 1], sizes = [2, 255], strides = [1, 1]} : vector<2x256xf32> to vector<2x255xf32>
    %290 = vector.extract_strided_slice %261 {offsets = [0, 0], sizes = [2, 1], strides = [1, 1]} : vector<2x256xf32> to vector<2x1xf32>
    %291 = tpu.concatenate %289, %290 in 1 : vector<2x255xf32>, vector<2x1xf32> -> vector<2x256xf32>
    %292 = vector.shape_cast %3 : vector<1x256xi1> to vector<1x256xi1>
    %293 = vector.broadcast %292 : vector<1x256xi1> to vector<2x256xi1>
    %294 = arith.select %293, %291, %288 : vector<2x256xi1>, vector<2x256xf32>
    %295 = vector.shape_cast %5 : vector<1x256xi1> to vector<1x256xi1>
    %296 = vector.broadcast %295 : vector<1x256xi1> to vector<2x256xi1>
    %297 = arith.select %296, %288, %291 : vector<2x256xi1>, vector<2x256xf32>
    %298 = tpu.concatenate %270, %258, %273, %282, %249, %285, %294, %261, %297 in 0 : vector<2x256xf32>, vector<2x256xf32>, vector<2x256xf32>, vector<2x256xf32>, vector<2x256xf32>, vector<2x256xf32>, vector<2x256xf32>, vector<2x256xf32>, vector<2x256xf32> -> vector<18x256xf32>
    %cst_39 = arith.constant dense<0.000000e+00> : vector<2x256xf32>
    %299 = tpu.matmul %11, %298, %cst_39 {dimension_numbers = #tpu.dot_dimension_numbers<[1], [0], [0], [1], [0, 0, 1, 1], [], []>} : vector<2x18xf32>, vector<18x256xf32>, vector<2x256xf32> -> vector<2x256xf32>
    %300 = vector.broadcast %14 : vector<2x1xf32> to vector<2x256xf32>
    %301 = arith.addf %299, %300 : vector<2x256xf32>
    %cst_40 = arith.constant 0.000000e+00 : f32
    %302 = vector.broadcast %cst_40 : f32 to vector<2x256xf32>
    %303 = arith.maximumf %301, %302 : vector<2x256xf32>
    %304 = vector.extract_strided_slice %303 {offsets = [0, 240], sizes = [2, 16], strides = [1, 1]} : vector<2x256xf32> to vector<2x16xf32>
    %305 = vector.extract_strided_slice %303 {offsets = [0, 0], sizes = [2, 240], strides = [1, 1]} : vector<2x256xf32> to vector<2x240xf32>
    %306 = tpu.concatenate %304, %305 in 1 : vector<2x16xf32>, vector<2x240xf32> -> vector<2x256xf32>
    %307 = vector.extract_strided_slice %303 {offsets = [0, 16], sizes = [2, 240], strides = [1, 1]} : vector<2x256xf32> to vector<2x240xf32>
    %308 = vector.extract_strided_slice %303 {offsets = [0, 0], sizes = [2, 16], strides = [1, 1]} : vector<2x256xf32> to vector<2x16xf32>
    %309 = tpu.concatenate %307, %308 in 1 : vector<2x240xf32>, vector<2x16xf32> -> vector<2x256xf32>
    %310 = vector.shape_cast %7 : vector<1x256xi1> to vector<1x256xi1>
    %311 = vector.broadcast %310 : vector<1x256xi1> to vector<2x256xi1>
    %312 = arith.select %311, %309, %306 : vector<2x256xi1>, vector<2x256xf32>
    %313 = vector.shape_cast %9 : vector<1x256xi1> to vector<1x256xi1>
    %314 = vector.broadcast %313 : vector<1x256xi1> to vector<2x256xi1>
    %315 = arith.select %314, %306, %309 : vector<2x256xi1>, vector<2x256xf32>
    %316 = vector.extract_strided_slice %312 {offsets = [0, 255], sizes = [2, 1], strides = [1, 1]} : vector<2x256xf32> to vector<2x1xf32>
    %317 = vector.extract_strided_slice %312 {offsets = [0, 0], sizes = [2, 255], strides = [1, 1]} : vector<2x256xf32> to vector<2x255xf32>
    %318 = tpu.concatenate %316, %317 in 1 : vector<2x1xf32>, vector<2x255xf32> -> vector<2x256xf32>
    %319 = vector.extract_strided_slice %312 {offsets = [0, 1], sizes = [2, 255], strides = [1, 1]} : vector<2x256xf32> to vector<2x255xf32>
    %320 = vector.extract_strided_slice %312 {offsets = [0, 0], sizes = [2, 1], strides = [1, 1]} : vector<2x256xf32> to vector<2x1xf32>
    %321 = tpu.concatenate %319, %320 in 1 : vector<2x255xf32>, vector<2x1xf32> -> vector<2x256xf32>
    %322 = vector.shape_cast %3 : vector<1x256xi1> to vector<1x256xi1>
    %323 = vector.broadcast %322 : vector<1x256xi1> to vector<2x256xi1>
    %324 = arith.select %323, %321, %318 : vector<2x256xi1>, vector<2x256xf32>
    %325 = vector.shape_cast %5 : vector<1x256xi1> to vector<1x256xi1>
    %326 = vector.broadcast %325 : vector<1x256xi1> to vector<2x256xi1>
    %327 = arith.select %326, %318, %321 : vector<2x256xi1>, vector<2x256xf32>
    %328 = vector.extract_strided_slice %303 {offsets = [0, 255], sizes = [2, 1], strides = [1, 1]} : vector<2x256xf32> to vector<2x1xf32>
    %329 = vector.extract_strided_slice %303 {offsets = [0, 0], sizes = [2, 255], strides = [1, 1]} : vector<2x256xf32> to vector<2x255xf32>
    %330 = tpu.concatenate %328, %329 in 1 : vector<2x1xf32>, vector<2x255xf32> -> vector<2x256xf32>
    %331 = vector.extract_strided_slice %303 {offsets = [0, 1], sizes = [2, 255], strides = [1, 1]} : vector<2x256xf32> to vector<2x255xf32>
    %332 = vector.extract_strided_slice %303 {offsets = [0, 0], sizes = [2, 1], strides = [1, 1]} : vector<2x256xf32> to vector<2x1xf32>
    %333 = tpu.concatenate %331, %332 in 1 : vector<2x255xf32>, vector<2x1xf32> -> vector<2x256xf32>
    %334 = vector.shape_cast %3 : vector<1x256xi1> to vector<1x256xi1>
    %335 = vector.broadcast %334 : vector<1x256xi1> to vector<2x256xi1>
    %336 = arith.select %335, %333, %330 : vector<2x256xi1>, vector<2x256xf32>
    %337 = vector.shape_cast %5 : vector<1x256xi1> to vector<1x256xi1>
    %338 = vector.broadcast %337 : vector<1x256xi1> to vector<2x256xi1>
    %339 = arith.select %338, %330, %333 : vector<2x256xi1>, vector<2x256xf32>
    %340 = vector.extract_strided_slice %315 {offsets = [0, 255], sizes = [2, 1], strides = [1, 1]} : vector<2x256xf32> to vector<2x1xf32>
    %341 = vector.extract_strided_slice %315 {offsets = [0, 0], sizes = [2, 255], strides = [1, 1]} : vector<2x256xf32> to vector<2x255xf32>
    %342 = tpu.concatenate %340, %341 in 1 : vector<2x1xf32>, vector<2x255xf32> -> vector<2x256xf32>
    %343 = vector.extract_strided_slice %315 {offsets = [0, 1], sizes = [2, 255], strides = [1, 1]} : vector<2x256xf32> to vector<2x255xf32>
    %344 = vector.extract_strided_slice %315 {offsets = [0, 0], sizes = [2, 1], strides = [1, 1]} : vector<2x256xf32> to vector<2x1xf32>
    %345 = tpu.concatenate %343, %344 in 1 : vector<2x255xf32>, vector<2x1xf32> -> vector<2x256xf32>
    %346 = vector.shape_cast %3 : vector<1x256xi1> to vector<1x256xi1>
    %347 = vector.broadcast %346 : vector<1x256xi1> to vector<2x256xi1>
    %348 = arith.select %347, %345, %342 : vector<2x256xi1>, vector<2x256xf32>
    %349 = vector.shape_cast %5 : vector<1x256xi1> to vector<1x256xi1>
    %350 = vector.broadcast %349 : vector<1x256xi1> to vector<2x256xi1>
    %351 = arith.select %350, %342, %345 : vector<2x256xi1>, vector<2x256xf32>
    %352 = tpu.concatenate %324, %312, %327, %336, %303, %339, %348, %315, %351 in 0 : vector<2x256xf32>, vector<2x256xf32>, vector<2x256xf32>, vector<2x256xf32>, vector<2x256xf32>, vector<2x256xf32>, vector<2x256xf32>, vector<2x256xf32>, vector<2x256xf32> -> vector<18x256xf32>
    %cst_41 = arith.constant dense<0.000000e+00> : vector<2x256xf32>
    %353 = tpu.matmul %12, %352, %cst_41 {dimension_numbers = #tpu.dot_dimension_numbers<[1], [0], [0], [1], [0, 0, 1, 1], [], []>} : vector<2x18xf32>, vector<18x256xf32>, vector<2x256xf32> -> vector<2x256xf32>
    %354 = vector.broadcast %15 : vector<2x1xf32> to vector<2x256xf32>
    %355 = arith.addf %353, %354 : vector<2x256xf32>
    %cst_42 = arith.constant 0.000000e+00 : f32
    %356 = vector.broadcast %cst_42 : f32 to vector<2x256xf32>
    %357 = arith.maximumf %355, %356 : vector<2x256xf32>
    %cst_43 = arith.constant dense<0.000000e+00> : vector<8x256xf32>
    %358 = tpu.matmul %16, %249, %cst_43 {dimension_numbers = #tpu.dot_dimension_numbers<[1], [0], [0], [1], [0, 0, 1, 1], [], []>} : vector<8x2xf32>, vector<2x256xf32>, vector<8x256xf32> -> vector<8x256xf32>
    %cst_44 = arith.constant dense<0.000000e+00> : vector<8x256xf32>
    %359 = tpu.matmul %17, %303, %cst_44 {dimension_numbers = #tpu.dot_dimension_numbers<[1], [0], [0], [1], [0, 0, 1, 1], [], []>} : vector<8x2xf32>, vector<2x256xf32>, vector<8x256xf32> -> vector<8x256xf32>
    %360 = arith.addf %358, %359 : vector<8x256xf32>
    %cst_45 = arith.constant dense<0.000000e+00> : vector<8x256xf32>
    %361 = tpu.matmul %18, %357, %cst_45 {dimension_numbers = #tpu.dot_dimension_numbers<[1], [0], [0], [1], [0, 0, 1, 1], [], []>} : vector<8x2xf32>, vector<2x256xf32>, vector<8x256xf32> -> vector<8x256xf32>
    %362 = arith.addf %360, %361 : vector<8x256xf32>
    %363 = vector.broadcast %19 : vector<8x1xf32> to vector<8x256xf32>
    %364 = arith.addf %362, %363 : vector<8x256xf32>
    %c1_46 = arith.constant 1 : index
    %c0_47 = arith.constant 0 : index
    %c0_48 = arith.constant 0 : index
    %365 = vector.load %arg13[%c1_46, %c0_47, %c0_48] : memref<2x8x256xf32, #tpu.memory_space<vmem>>, vector<1x8x256xf32>
    %366 = vector.shape_cast %365 : vector<1x8x256xf32> to vector<8x256xf32>
    %367 = vector.shape_cast %364 : vector<8x256xf32> to vector<1x8x256xf32>
    tpu.vector_store %arg13[%c1_46, %c0_47, %c0_48], %367 {strides = array<i32>} : memref<2x8x256xf32, #tpu.memory_space<vmem>>, vector<1x8x256xf32>,
    return
  }
  func.func @transform_0(%arg0: i32) -> (i32, i32) {
    %c0_i32 = arith.constant 0 : i32
    %c0_i32_0 = arith.constant 0 : i32
    %c0_i32_1 = arith.constant 0 : i32
    return %c0_i32, %c0_i32_0 : i32, i32
  }
  func.func @transform_1(%arg0: i32) -> (i32, i32, i32) {
    %c0_i32 = arith.constant 0 : i32
    %c0_i32_0 = arith.constant 0 : i32
    %c0_i32_1 = arith.constant 0 : i32
    return %arg0, %c0_i32, %c0_i32_0 : i32, i32, i32
  }
  func.func @transform_2(%arg0: i32) -> (i32, i32) {
    %c0_i32 = arith.constant 0 : i32
    %c0_i32_0 = arith.constant 0 : i32
    %c0_i32_1 = arith.constant 0 : i32
    return %c0_i32, %c0_i32_0 : i32, i32
  }
  func.func @transform_3(%arg0: i32) -> (i32, i32) {
    %c0_i32 = arith.constant 0 : i32
    %c0_i32_0 = arith.constant 0 : i32
    %c0_i32_1 = arith.constant 0 : i32
    return %c0_i32, %c0_i32_0 : i32, i32
  }
  func.func @transform_4(%arg0: i32) -> (i32, i32) {
    %c0_i32 = arith.constant 0 : i32
    %c0_i32_0 = arith.constant 0 : i32
    %c0_i32_1 = arith.constant 0 : i32
    return %c0_i32, %c0_i32_0 : i32, i32
  }
  func.func @transform_5(%arg0: i32) -> (i32, i32) {
    %c0_i32 = arith.constant 0 : i32
    %c0_i32_0 = arith.constant 0 : i32
    %c0_i32_1 = arith.constant 0 : i32
    return %c0_i32, %c0_i32_0 : i32, i32
  }
  func.func @transform_6(%arg0: i32) -> (i32, i32) {
    %c0_i32 = arith.constant 0 : i32
    %c0_i32_0 = arith.constant 0 : i32
    %c0_i32_1 = arith.constant 0 : i32
    return %c0_i32, %c0_i32_0 : i32, i32
  }
  func.func @transform_7(%arg0: i32) -> (i32, i32) {
    %c0_i32 = arith.constant 0 : i32
    %c0_i32_0 = arith.constant 0 : i32
    %c0_i32_1 = arith.constant 0 : i32
    return %c0_i32, %c0_i32_0 : i32, i32
  }
  func.func @transform_8(%arg0: i32) -> (i32, i32) {
    %c0_i32 = arith.constant 0 : i32
    %c0_i32_0 = arith.constant 0 : i32
    %c0_i32_1 = arith.constant 0 : i32
    return %c0_i32, %c0_i32_0 : i32, i32
  }
  func.func @transform_9(%arg0: i32) -> (i32, i32) {
    %c0_i32 = arith.constant 0 : i32
    %c0_i32_0 = arith.constant 0 : i32
    %c0_i32_1 = arith.constant 0 : i32
    return %c0_i32, %c0_i32_0 : i32, i32
  }
  func.func @transform_10(%arg0: i32) -> (i32, i32) {
    %c0_i32 = arith.constant 0 : i32
    %c0_i32_0 = arith.constant 0 : i32
    %c0_i32_1 = arith.constant 0 : i32
    return %c0_i32, %c0_i32_0 : i32, i32
  }
  func.func @transform_11(%arg0: i32) -> (i32, i32) {
    %c0_i32 = arith.constant 0 : i32
    %c0_i32_0 = arith.constant 0 : i32
    %c0_i32_1 = arith.constant 0 : i32
    return %c0_i32, %c0_i32_0 : i32, i32
  }
  func.func @transform_12(%arg0: i32) -> (i32, i32, i32) {
    %c0_i32 = arith.constant 0 : i32
    %c0_i32_0 = arith.constant 0 : i32
    %c0_i32_1 = arith.constant 0 : i32
    return %arg0, %c0_i32, %c0_i32_0 : i32, i32, i32
  }
}

</mosaic_0001>

<bundles_post_ra>
// kernel: tpu_custom_call.1
= control target key start
LH: loop header
LB: loop body
LE: loop exit
PB: predicated region body
PF: predicated region fallthrough
CT: control target
= control target key end

     0   :  { %v43_v2 = vlaneseq  ;;  %s2074_s25 = smov 16   ;;  %s2075_s26 = smov 112   ;;  %v2076_v5 = vmov 0   ;;  %s2860_s0 = inlined_call_operand.vmem [shape: s32[1,256], index: 0, kind: input, shape index: {}]   ;;  %s2861_s1 = inlined_call_operand.vmem [shape: f32[2,8,256], index: 1, kind: input, shape index: {}]   ;;  %s2862_s2 = inlined_call_operand.vmem [shape: f32[2,72], index: 2, kind: input, shape index: {}]   ;;  %s2863_s3 = inlined_call_operand.vmem [shape: f32[2,1], index: 3, kind: input, shape index: {}]   ;;  %s2864_s4 = inlined_call_operand.vmem [shape: f32[2,18], index: 4, kind: input, shape index: {}]   ;;  %s2865_s5 = inlined_call_operand.vmem [shape: f32[2,1], index: 5, kind: input, shape index: {}]   ;;  %s2866_s6 = inlined_call_operand.vmem [shape: f32[2,18], index: 6, kind: input, shape index: {}]   ;;  %s2867_s7 = inlined_call_operand.vmem [shape: f32[2,1], index: 7, kind: input, shape index: {}]   ;;  %s2868_s8 = inlined_call_operand.vmem [shape: f32[8,2], index: 8, kind: input, shape index: {}]   ;;  %s2869_s9 = inlined_call_operand.vmem [shape: f32[8,2], index: 9, kind: input, shape index: {}]   ;;  %s2870_s10 = inlined_call_operand.vmem [shape: f32[8,2], index: 10, kind: input, shape index: {}]   ;;  %s2871_s11 = inlined_call_operand.vmem [shape: f32[8,1], index: 11, kind: input, shape index: {}]   ;;  %s2872_s12 = inlined_call_operand.hbm [shape: f32[2,8,256], index: 12, kind: output, shape index: {}]  }
   0x1   :  { %v2150_v0 = vld [vmem:[%s2861_s1 + $0x8] sm:$0xff]  ;;  %v2155_v1 = vld [vmem:[%s2861_s1] sm:$0xff]  ;;  %1948 = vset.pattern.permute.xlu0 %v2076_v5  ;;  %2009 = vset.pattern.permute.xlu1 %v2076_v5 }
   0x2   :  { %65 = vrot.lane.b32.xlu0 %v2150_v0, %s2074_s25  ;;  %76 = vrot.lane.b32.xlu1 %v2155_v1, %s2075_s26  ;;  %v42_v3 = vld [vmem:[%s2860_s0] sm:$0x3]  ;;  %v122_v4 = vshrl.u32 %v43_v2, 7 }
   0x3   :  { %vm46_vm0 = vcmp.eq.s32.totalorder %v42_v3, 0  ;;  %vm47_vm1 = vcmp.eq.s32.totalorder %v42_v3, 15 }
   0x4   :  { %17 = vsyncpa [#allocation3], 0  ;;  %v120_v6 = vsel %vm46_vm0, 1, %v2076_v5  ;;  %v133_v7 = vsel %vm47_vm1, 1, %v2076_v5  ;;  %v123_v8 = vsub.s32 0, %v122_v4  ;;  %v127_v9 = vsub.s32 1, %v122_v4 }
   0x5   :  { %v2176_v16 = vand.u32 127, %v43_v2  ;;  %vm80_vm2 = vcmask 916480   ;;  %vm71_vm3 = vcmask 130048   ;;  %s2077_s0 = smov 127   ;;  %s2078_s29 = smov 1   ;;  %v1943_v25 = vpack.i.bf16 %v2150_v0, %v2155_v1 }
   0x6   :  { %78 = vrot.lane.b32.xlu1 %v2150_v0, %s2075_s26  ;;  %69 = vrot.lane.b32.xlu0 %v2155_v1, %s2074_s25  ;;  %v2168_v10 = vrot.slane %v120_v6, %v123_v8  ;;  %v2170_v11 = vrot.slane %v120_v6, %v127_v9  ;;  %v2172_v12 = vrot.slane %v133_v7, %v123_v8  ;;  %v2079_v30 = vmov 0.0   ;;  %v55_v31 = vld [vmem:[%s2863_s3] sm:$0x3] }
   0x7   :  { %v2174_v13 = vrot.slane %v133_v7, %v127_v9  ;;  %vm48_vm4 = vcmp.lt.s32.totalorder %v2176_v16, 16  ;;  %v1933_v26 = vpack.i.bf16 %v2155_v1, %v2150_v0  ;;  %v2194_v27 = vadd.s32 128, %v2176_v16  ;;  %265 = vmatprep.mubr.f32.mxu0 %v2079_v30  ;;  %494 = vmatprep.mubr.f32.mxu1 %v2079_v30  ;;  %v61_v16 = vld [vmem:[%s2871_s11] sm:$0xff]  ;;  %s2080_s11 = smov [#allocation2]  }
   0x8   :  { %vm129_vm6 = vcmp.eq.s32.totalorder %v2168_v10, 1  ;;  %vm130_vm7 = vcmp.eq.s32.totalorder %v2170_v11, 1  ;;  %vm114_vm8 = vcmask 1039360   ;;  %vm105_vm9 = vcmask 7168   ;;  %s1819_s27 = sshll.u32 %s2080_s11, 4  ;;  %s1820_s27 = int_to_ptr.vmem [resolvable:$true] %s1819_s27 }
   0x9   :  { %vm51_vm5 = vcmp.ge.s32.totalorder %v2194_v27, 240  ;;  %vm142_vm10 = vcmp.eq.s32.totalorder %v2172_v12, 1  ;;  %vm143_vm11 = vcmp.eq.s32.totalorder %v2174_v13, 1  ;;  %vm197_vm12 = vcmask 588800   ;;  %s2050_s28 = scalar_lea.vmem %s1820_s27, 512  ;;  %p2055_p1 = scmp.lt.s32.totalorder %s1820_s27, %s1820_s27 }
   0xa   :  { %vm400_vm13 = vcmask 1041408   ;;  %vm403_vm14 = vcmask 1043456   ;;  %vm406_vm15 = vcmask 1045504   ;;  %vm420_vm0 = vcmask 146432   ;;  %p2051_p0 = scmp.ne.s32.totalorder %s1820_s27, %s2050_s28  ;;  %p2056_p2 = scmp.lt.s32.totalorder %s2050_s28, %s2050_s28 }
   0xb   :  { %vm728_vm1 = vcmask 15360  }
   0xc   :  { %p2057_p3 = por %p2056_p2, %p2055_p1 }
   0xe   :  { %p2058_p4 = pnand %p2057_p3, %p2051_p0 }
  0x74   :  { %v66_v14 = vpop.permute.xlu0 %65  ;;  %v77_v15 = vpop.permute.xlu1 %76 }
  0x78   :  { %v79_v17 = vpop.permute.xlu1 %78  ;;  %v70_v18 = vpop.permute.xlu0 %69 }
  0x79   :  { %v2180_v19 = vsel %vm80_vm2, %v77_v15, %v79_v17  ;;  %v72_v20 = vsel %vm71_vm3, %v70_v18, %v66_v14  ;;  %v75_v21 = vsel %vm71_vm3, %v66_v14, %v70_v18  ;;  %v85_v28 = vsel %vm80_vm2, %v79_v17, %v77_v15 }
  0x7a   :  { %v90_v22 = vsel %vm48_vm4, %v2180_v19, %v75_v21  ;;  %v2202_v29 = vsel %vm51_vm5, %v72_v20, %v85_v28 }
  0x7b   :  { %v1938_v23 = vpack.i.bf16 %v72_v20, %v90_v22  ;;  %v1928_v24 = vpack.i.bf16 %v90_v22, %v72_v20 }
  0x7d   :  { %1939 = vrot.lane.b32.xlu1 %v1938_v23, %s2077_s0  ;;  %1929 = vrot.lane.b32.xlu0 %v1928_v24, %s2078_s29 }
  0x81   :  { %1944 = vrot.lane.b32.xlu1 %v1943_v25, %s2077_s0  ;;  %1934 = vrot.lane.b32.xlu0 %v1933_v26, %s2078_s29 }
  0x85   :  { %173 = vrot.lane.b32.xlu1 %v2180_v19, %s2078_s29  ;;  %169 = vrot.lane.b32.xlu0 %v2202_v29, %s2078_s29 }
  0x89   :  { %181 = vrot.lane.b32.xlu1 %v2202_v29, %s2077_s0  ;;  %179 = vrot.lane.b32.xlu0 %v2180_v19, %s2077_s0 }
  0x8d   :  { %194 = vperm.xlu0 %1948, %v55_v31  }
  0xef   :  { %v1940_v32 = vpop.permute.xlu1 %1939  ;;  %v1930_v33 = vpop.permute.xlu0 %1929 }
  0xf0   :  { %v1942_v34 = vunpack.i.h.bf16 %v1940_v32  ;;  %v1941_v35 = vunpack.i.l.bf16 %v1940_v32  ;;  %v1932_v36 = vunpack.i.h.bf16 %v1930_v33  ;;  %v1931_v37 = vunpack.i.l.bf16 %v1930_v33 }
  0xf2   :  { %v106_v38 = vsel %vm105_vm9, %v1932_v36, %v1931_v37  ;;  %v119_v39 = vsel %vm114_vm8, %v1942_v34, %v1941_v35  ;;  %v109_v40 = vsel %vm105_vm9, %v1931_v37, %v1932_v36  ;;  %v115_v41 = vsel %vm114_vm8, %v1941_v35, %v1942_v34 }
  0xf3   :  { %v1945_v42 = vpop.permute.xlu1 %1944  ;;  %v1935_v43 = vpop.permute.xlu0 %1934  ;;  %v132_v44 = vsel %vm130_vm7, %v119_v39, %v106_v38  ;;  %v131_v45 = vsel %vm129_vm6, %v115_v41, %v109_v40  ;;  %v145_v58 = vsel %vm143_vm11, %v106_v38, %v119_v39  ;;  %v144_v60 = vsel %vm142_vm10, %v109_v40, %v115_v41 }
  0xf4   :  { %v1947_v46 = vunpack.i.h.bf16 %v1945_v42  ;;  %v1946_v47 = vunpack.i.l.bf16 %v1945_v42  ;;  %v1937_v48 = vunpack.i.h.bf16 %v1935_v43  ;;  %v1936_v49 = vunpack.i.l.bf16 %v1935_v43 }
  0xf5   :  { %v1864_v50 = vpack.c.bf16 %v72_v20, %v132_v44  ;;  %v1866_v51 = vpack.c.bf16 %v90_v22, %v131_v45  ;;  %v2262_v22 = vld [vmem:[%s2862_s2] sm:$0x3]  ;;  %v2315_v45 = vld [vmem:[%s2861_s1 + $0x10] sm:$0xff] }
  0xf6   :  { %v159_v52 = vsel %vm114_vm8, %v1946_v47, %v1947_v46  ;;  %v163_v53 = vsel %vm114_vm8, %v1947_v46, %v1946_v47  ;;  %v151_v54 = vsel %vm105_vm9, %v1937_v48, %v1936_v49  ;;  %v154_v55 = vsel %vm105_vm9, %v1936_v49, %v1937_v48  ;;  %v2324_v46 = vld [vmem:[%s2861_s1 + $0x18] sm:$0xff] }
  0xf7   :  { %1865 = vmatprep.subr.bf16.mxu0 %v1864_v50  ;;  %v174_v56 = vpop.permute.xlu1 %173  ;;  %v170_v57 = vpop.permute.xlu0 %169  ;;  %v165_v59 = vsel %vm130_vm7, %v163_v53, %v151_v54  ;;  %v164_v61 = vsel %vm129_vm6, %v159_v52, %v154_v55  ;;  %v167_v2 = vsel %vm143_vm11, %v151_v54, %v163_v53  ;;  %v166_v6 = vsel %vm142_vm10, %v154_v55, %v159_v52 }
  0xf8   :  { %1867 = vmatpush1.bf16.msra.mxu0 %v1866_v51  ;;  %v1868_v62 = vpack.c.bf16 %v165_v59, %v145_v58  ;;  %v1870_v63 = vpack.c.bf16 %v164_v61, %v144_v60  ;;  %v1872_v5 = vpack.c.bf16 %v167_v2, %v2150_v0  ;;  %v175_v7 = vsel %vm105_vm9, %v174_v56, %v170_v57 }
  0xf9   :  { %v178_v15 = vsel %vm105_vm9, %v170_v57, %v174_v56  ;;  %v1874_v17 = vpack.c.bf16 %v166_v6, %v2155_v1 }
  0xfa   :  { %1869 = vmatprep.subr.bf16.mxu0 %v1868_v62 }
  0xfb   :  { %v182_v3 = vpop.permute.xlu1 %181  ;;  %v180_v4 = vpop.permute.xlu0 %179 }
  0xfc   :  { %v183_v8 = vsel %vm114_vm8, %v180_v4, %v182_v3  ;;  %v187_v9 = vsel %vm114_vm8, %v182_v3, %v180_v4  ;;  %1871 = vmatpush1.bf16.msra.mxu0 %v1870_v63 }
  0xfd   :  { %v189_v14 = vsel %vm130_vm7, %v187_v9, %v175_v7  ;;  %1873 = vmatprep.subr.bf16.mxu0 %v1872_v5  ;;  %v188_v18 = vsel %vm129_vm6, %v183_v8, %v178_v15  ;;  %v191_v21 = vsel %vm143_vm11, %v175_v7, %v187_v9  ;;  %v190_v1 = vsel %vm142_vm10, %v178_v15, %v183_v8 }
  0xfe   :  { %v1876_v0 = vpack.c.bf16 %v2202_v29, %v189_v14  ;;  %v1878_v20 = vpack.c.bf16 %v2180_v19, %v188_v18 }
 0x100   :  { %1875 = vmatpush1.bf16.msra.mxu0 %v1874_v17 }
 0x101   :  { %1877 = vmatprep.subr.bf16.mxu0 %v1876_v0 }
 0x104   :  { %1879 = vmatpush1.bf16.msra.mxu0 %v1878_v20 }
 0x105   :  { %217 = vmatprep.subr.mxu0 %v191_v21 }
 0x108   :  { %218 = vmatpush1.msra.mxu0 %v190_v1 }
 0x109   :  { %1830 = vmatmul.mubr.msk.f32.vlgmr.msra.gmra.mrb[0].mxu0 %vm197_vm12, %v2262_v22 }
 0x10a   :  { %1137 = vmatprep.mubr.f32.mxu0 %v2079_v30 }
 0x10c   :  { %v2269_v19 = vpop.permute.xlu0 %194 }
 0x1dc   :  { %v267_v23 = vpop.f32.mrb[0].mxu0 }
 0x1dd   :  { %v268_v24 = vadd.f32 %v267_v23, %v2269_v19  ;;  %v269_v25 = vpop.f32.mrb[1].mxu0 }
 0x1de   :  { %v270_v26 = vadd.f32 %v269_v25, %v2269_v19 }
 0x1df   :  { %v2273_v28 = vmax.f32 %v268_v24, 0.0 }
 0x1e0   :  { %v2275_v29 = vmax.f32 %v270_v26, 0.0 }
 0x1e1   :  { %285 = vrot.lane.b32.xlu0 %v2273_v28, %s2075_s26  ;;  %279 = vrot.lane.b32.xlu1 %v2273_v28, %s2074_s25 }
 0x1e2   :  { %v1949_v31 = vpack.i.bf16 %v2273_v28, %v2275_v29  ;;  %v1954_v32 = vpack.i.bf16 %v2275_v29, %v2273_v28 }
 0x1e5   :  { %1950 = vrot.lane.b32.xlu0 %v1949_v31, %s2078_s29  ;;  %275 = vrot.lane.b32.xlu1 %v2275_v29, %s2074_s25 }
 0x1e9   :  { %287 = vrot.lane.b32.xlu1 %v2275_v29, %s2075_s26 }
 0x1ed   :  { %1955 = vrot.lane.b32.xlu1 %v1954_v32, %s2077_s0 }
 0x253   :  { %v280_v33 = vpop.permute.xlu1 %279  ;;  %v286_v35 = vpop.permute.xlu0 %285 }
 0x257   :  { %v276_v34 = vpop.permute.xlu1 %275  ;;  %v1951_v48 = vpop.permute.xlu0 %1950 }
 0x258   :  { %v284_v37 = vsel %vm71_vm3, %v276_v34, %v280_v33  ;;  %v281_v39 = vsel %vm71_vm3, %v280_v33, %v276_v34  ;;  %v1953_v52 = vunpack.i.h.bf16 %v1951_v48  ;;  %v1952_v53 = vunpack.i.l.bf16 %v1951_v48 }
 0x259   :  { %v369_v63 = vrot.slane %v281_v39, 6 }
 0x25a   :  { %v327_v62 = vsel %vm105_vm9, %v1953_v52, %v1952_v53  ;;  %v330_v4 = vsel %vm105_vm9, %v1952_v53, %v1953_v52 }
 0x25b   :  { %v288_v36 = vpop.permute.xlu1 %287 }
 0x25c   :  { %v2293_v38 = vsel %vm80_vm2, %v286_v35, %v288_v36  ;;  %v293_v43 = vsel %vm80_vm2, %v288_v36, %v286_v35 }
 0x25d   :  { %v294_v40 = vsel %vm48_vm4, %v2293_v38, %v284_v37  ;;  %349 = vrot.lane.b32.xlu1 %v2293_v38, %s2078_s29  ;;  %v2306_v44 = vsel %vm51_vm5, %v281_v39, %v293_v43 }
 0x25e   :  { %v1959_v41 = vpack.i.bf16 %v294_v40, %v281_v39  ;;  %v1964_v42 = vpack.i.bf16 %v281_v39, %v294_v40  ;;  %v368_v0 = vrot.slane %v294_v40, 6  ;;  %v396_v40 = vrot.slane %v2293_v38, 2 }
 0x25f   :  { %v1956_v47 = vpop.permute.xlu1 %1955 }
 0x260   :  { %1960 = vrot.lane.b32.xlu0 %v1959_v41, %s2078_s29  ;;  %v1958_v50 = vunpack.i.h.bf16 %v1956_v47  ;;  %v1957_v51 = vunpack.i.l.bf16 %v1956_v47  ;;  %v397_v41 = vrot.slane %v2306_v44, 2 }
 0x261   :  { %1965 = vrot.lane.b32.xlu1 %v1964_v42, %s2077_s0 }
 0x262   :  { %v335_v58 = vsel %vm114_vm8, %v1957_v51, %v1958_v50  ;;  %v339_v59 = vsel %vm114_vm8, %v1958_v50, %v1957_v51 }
 0x263   :  { %v342_v8 = vsel %vm142_vm10, %v330_v4, %v335_v58  ;;  %v343_v9 = vsel %vm143_vm11, %v327_v62, %v339_v59  ;;  %v341_v1 = vsel %vm130_vm7, %v339_v59, %v327_v62  ;;  %v340_v24 = vsel %vm129_vm6, %v335_v58, %v330_v4 }
 0x264   :  { %345 = vrot.lane.b32.xlu0 %v2306_v44, %s2078_s29  ;;  %v386_v25 = vrot.slane %v342_v8, 6  ;;  %v387_v26 = vrot.slane %v343_v9, 6  ;;  %v381_v52 = vrot.slane %v341_v1, 2  ;;  %v2394_v9 = vld [vmem:[%s2864_s4] sm:$0x3] }
 0x265   :  { %357 = vrot.lane.b32.xlu1 %v2306_v44, %s2077_s0 }
 0x266   :  { %v410_v53 = vsel %vm400_vm13, %v2275_v29, %v387_v26  ;;  %v409_v44 = vsel %vm400_vm13, %v2273_v28, %v386_v25 }
 0x268   :  { %355 = vrot.lane.b32.xlu0 %v2293_v38, %s2077_s0  ;;  %v380_v38 = vrot.slane %v340_v24, 2 }
 0x269   :  { %984 = vrot.lane.b32.xlu1 %v2315_v45, %s2074_s25 }
 0x26c   :  { %980 = vrot.lane.b32.xlu0 %v2324_v46, %s2074_s25 }
 0x26d   :  { %992 = vrot.lane.b32.xlu1 %v2324_v46, %s2075_s26 }
 0x270   :  { %990 = vrot.lane.b32.xlu0 %v2315_v45, %s2075_s26 }
 0x2cf   :  { %v350_v49 = vpop.permute.xlu1 %349 }
 0x2d2   :  { %v1961_v54 = vpop.permute.xlu0 %1960 }
 0x2d3   :  { %v1963_v55 = vunpack.i.h.bf16 %v1961_v54  ;;  %v1962_v56 = vunpack.i.l.bf16 %v1961_v54  ;;  %v1966_v57 = vpop.permute.xlu1 %1965 }
 0x2d4   :  { %v1968_v60 = vunpack.i.h.bf16 %v1966_v57  ;;  %v1967_v61 = vunpack.i.l.bf16 %v1966_v57 }
 0x2d5   :  { %v305_v2 = vsel %vm105_vm9, %v1963_v55, %v1962_v56  ;;  %v308_v3 = vsel %vm105_vm9, %v1962_v56, %v1963_v55 }
 0x2d6   :  { %v313_v5 = vsel %vm114_vm8, %v1967_v61, %v1968_v60  ;;  %v317_v6 = vsel %vm114_vm8, %v1968_v60, %v1967_v61  ;;  %v346_v7 = vpop.permute.xlu0 %345 }
 0x2d7   :  { %v318_v14 = vsel %vm129_vm6, %v313_v5, %v308_v3  ;;  %v320_v15 = vsel %vm142_vm10, %v308_v3, %v313_v5  ;;  %v358_v17 = vpop.permute.xlu1 %357  ;;  %v319_v18 = vsel %vm130_vm7, %v317_v6, %v305_v2  ;;  %v321_v20 = vsel %vm143_vm11, %v305_v2, %v317_v6 }
 0x2d8   :  { %v374_v21 = vrot.slane %v320_v15, 4  ;;  %v375_v23 = vrot.slane %v321_v20, 4  ;;  %v402_v32 = vsel %vm400_vm13, %v319_v18, %v369_v63  ;;  %v401_v33 = vsel %vm400_vm13, %v318_v14, %v368_v0 }
 0x2d9   :  { %v351_v34 = vsel %vm105_vm9, %v350_v49, %v346_v7  ;;  %v354_v35 = vsel %vm105_vm9, %v346_v7, %v350_v49  ;;  %v1979_v15 = vpack.i.bf16 %v2315_v45, %v2324_v46  ;;  %v1984_v18 = vpack.i.bf16 %v2324_v46, %v2315_v45 }
 0x2da   :  { %v356_v31 = vpop.permute.xlu0 %355  ;;  %v405_v50 = vsel %vm403_vm14, %v402_v32, %v375_v23  ;;  %v404_v49 = vsel %vm403_vm14, %v401_v33, %v374_v21 }
 0x2db   :  { %v359_v36 = vsel %vm114_vm8, %v356_v31, %v358_v17  ;;  %v363_v37 = vsel %vm114_vm8, %v358_v17, %v356_v31  ;;  %v985_v39 = vpop.permute.xlu1 %984  ;;  %v408_v57 = vsel %vm406_vm15, %v405_v50, %v381_v52  ;;  %v407_v59 = vsel %vm406_vm15, %v404_v49, %v380_v38  ;;  %v56_v17 = vld [vmem:[%s2865_s5] sm:$0x3] }
 0x2dc   :  { %v364_v42 = vsel %vm129_vm6, %v359_v36, %v354_v35  ;;  %v365_v43 = vsel %vm130_vm7, %v363_v37, %v351_v34  ;;  %v367_v6 = vsel %vm143_vm11, %v351_v34, %v363_v37  ;;  %v366_v14 = vsel %vm142_vm10, %v354_v35, %v359_v36 }
 0x2dd   :  { %v392_v47 = vrot.slane %v364_v42, 4  ;;  %v393_v48 = vrot.slane %v365_v43, 4 }
 0x2de   :  { %v981_v51 = vpop.permute.xlu0 %980 }
 0x2df   :  { %v412_v54 = vsel %vm403_vm14, %v410_v53, %v393_v48  ;;  %v411_v55 = vsel %vm403_vm14, %v409_v44, %v392_v47  ;;  %v993_v56 = vpop.permute.xlu1 %992  ;;  %v989_v61 = vsel %vm71_vm3, %v981_v51, %v985_v39  ;;  %v986_v2 = vsel %vm71_vm3, %v985_v39, %v981_v51 }
 0x2e0   :  { %v414_v58 = vsel %vm406_vm15, %v412_v54, %v397_v41  ;;  %v413_v60 = vsel %vm406_vm15, %v411_v55, %v396_v40 }
 0x2e1   :  { %v1880_v62 = vpack.c.bf16 %v414_v58, %v408_v57  ;;  %v1882_v63 = vpack.c.bf16 %v413_v60, %v407_v59 }
 0x2e2   :  { %v991_v3 = vpop.permute.xlu0 %990 }
 0x2e3   :  { %v2383_v4 = vsel %vm80_vm2, %v991_v3, %v993_v56  ;;  %1881 = vmatprep.subr.bf16.mxu1 %v1880_v62  ;;  %v998_v0 = vsel %vm80_vm2, %v993_v56, %v991_v3 }
 0x2e4   :  { %v999_v5 = vsel %vm48_vm4, %v2383_v4, %v989_v61  ;;  %1883 = vmatpush1.bf16.msra.mxu1 %v1882_v63  ;;  %v1002_v20 = vsel %vm51_vm5, %v986_v2, %v998_v0 }
 0x2e5   :  { %1831 = vmatprep.subr.msk.mxu1 %vm400_vm13, %v367_v6  ;;  %v1974_v7 = vpack.i.bf16 %v986_v2, %v999_v5  ;;  %v1969_v8 = vpack.i.bf16 %v999_v5, %v986_v2 }
 0x2e7   :  { %1975 = vrot.lane.b32.xlu1 %v1974_v7, %s2077_s0  ;;  %1970 = vrot.lane.b32.xlu0 %v1969_v8, %s2078_s29 }
 0x2e8   :  { %1832 = vmatpush1.msk.msra.mxu1 %vm400_vm13, %v366_v14 }
 0x2e9   :  { %1833 = vmatmul.mubr.msk.f32.vlgmr.msra.gmra.mrb[0].mxu1 %vm420_vm0, %v2394_v9 }
 0x2ea   :  { %719 = vmatprep.mubr.f32.mxu1 %v2079_v30 }
 0x2eb   :  { %417 = vperm.xlu0 %1948, %v56_v17   ;;  %1980 = vrot.lane.b32.xlu1 %v1979_v15, %s2078_s29 }
 0x2ef   :  { %1985 = vrot.lane.b32.xlu0 %v1984_v18, %s2077_s0  ;;  %1050 = vrot.lane.b32.xlu1 %v1002_v20, %s2078_s29 }
 0x2f3   :  { %1054 = vrot.lane.b32.xlu0 %v2383_v4, %s2078_s29  ;;  %1060 = vrot.lane.b32.xlu1 %v2383_v4, %s2077_s0 }
 0x2f7   :  { %1062 = vrot.lane.b32.xlu0 %v1002_v20, %s2077_s0 }
 0x359   :  { %v1976_v21 = vpop.permute.xlu1 %1975  ;;  %v1971_v1 = vpop.permute.xlu0 %1970 }
 0x35a   :  { %v1978_v23 = vunpack.i.h.bf16 %v1976_v21  ;;  %v1977_v24 = vunpack.i.l.bf16 %v1976_v21  ;;  %v1973_v25 = vunpack.i.h.bf16 %v1971_v1  ;;  %v1972_v26 = vunpack.i.l.bf16 %v1971_v1 }
 0x35c   :  { %v1018_v31 = vsel %vm114_vm8, %v1977_v24, %v1978_v23  ;;  %v1022_v32 = vsel %vm114_vm8, %v1978_v23, %v1977_v24  ;;  %v1010_v33 = vsel %vm105_vm9, %v1973_v25, %v1972_v26  ;;  %v1013_v34 = vsel %vm105_vm9, %v1972_v26, %v1973_v25 }
 0x35d   :  { %v1024_v35 = vsel %vm130_vm7, %v1022_v32, %v1010_v33  ;;  %v1023_v36 = vsel %vm129_vm6, %v1018_v31, %v1013_v34  ;;  %v1981_v40 = vpop.permute.xlu1 %1980  ;;  %v1026_v53 = vsel %vm143_vm11, %v1010_v33, %v1022_v32  ;;  %v1025_v38 = vsel %vm142_vm10, %v1013_v34, %v1018_v31 }
 0x35e   :  { %v1888_v37 = vpack.c.bf16 %v986_v2, %v1024_v35  ;;  %v1890_v39 = vpack.c.bf16 %v999_v5, %v1023_v36  ;;  %v1983_v42 = vunpack.i.h.bf16 %v1981_v40  ;;  %v1982_v43 = vunpack.i.l.bf16 %v1981_v40 }
 0x360   :  { %1889 = vmatprep.subr.bf16.mxu0 %v1888_v37  ;;  %v1032_v50 = vsel %vm105_vm9, %v1983_v42, %v1982_v43  ;;  %v1035_v49 = vsel %vm105_vm9, %v1982_v43, %v1983_v42 }
 0x361   :  { %1891 = vmatpush1.bf16.msra.mxu0 %v1890_v39  ;;  %v1051_v48 = vpop.permute.xlu1 %1050 }
 0x365   :  { %v1061_v62 = vpop.permute.xlu1 %1060 }
 0x36a   :  { %v2430_v41 = vpop.permute.xlu0 %417 }
 0x36e   :  { %v1986_v47 = vpop.permute.xlu0 %1985 }
 0x36f   :  { %v1988_v51 = vunpack.i.h.bf16 %v1986_v47  ;;  %v1987_v52 = vunpack.i.l.bf16 %v1986_v47 }
 0x371   :  { %v1040_v44 = vsel %vm114_vm8, %v1987_v52, %v1988_v51  ;;  %v1044_v54 = vsel %vm114_vm8, %v1988_v51, %v1987_v52  ;;  %v57_v52 = vld [vmem:[%s2867_s7] sm:$0x3] }
 0x372   :  { %v1055_v55 = vpop.permute.xlu0 %1054  ;;  %v1046_v56 = vsel %vm130_vm7, %v1044_v54, %v1032_v50  ;;  %v1045_v57 = vsel %vm129_vm6, %v1040_v44, %v1035_v49  ;;  %v1048_v58 = vsel %vm143_vm11, %v1032_v50, %v1044_v54  ;;  %v1047_v61 = vsel %vm142_vm10, %v1035_v49, %v1040_v44 }
 0x373   :  { %v1892_v59 = vpack.c.bf16 %v1046_v56, %v1026_v53  ;;  %v1894_v60 = vpack.c.bf16 %v1045_v57, %v1025_v38  ;;  %v1896_v63 = vpack.c.bf16 %v1048_v58, %v2324_v46  ;;  %v1056_v2 = vsel %vm105_vm9, %v1055_v55, %v1051_v48 }
 0x374   :  { %v1059_v3 = vsel %vm105_vm9, %v1051_v48, %v1055_v55  ;;  %v1898_v6 = vpack.c.bf16 %v1047_v61, %v2315_v45 }
 0x375   :  { %1893 = vmatprep.subr.bf16.mxu0 %v1892_v59 }
 0x376   :  { %v1063_v5 = vpop.permute.xlu0 %1062  ;;  %1895 = vmatpush1.bf16.msra.mxu0 %v1894_v60 }
 0x377   :  { %v1064_v7 = vsel %vm114_vm8, %v1061_v62, %v1063_v5  ;;  %v1068_v8 = vsel %vm114_vm8, %v1063_v5, %v1061_v62  ;;  %1897 = vmatprep.subr.bf16.mxu0 %v1896_v63 }
 0x378   :  { %v1070_v14 = vsel %vm130_vm7, %v1068_v8, %v1056_v2  ;;  %v1069_v46 = vsel %vm129_vm6, %v1064_v7, %v1059_v3  ;;  %v1072_v0 = vsel %vm143_vm11, %v1056_v2, %v1068_v8  ;;  %v1071_v45 = vsel %vm142_vm10, %v1059_v3, %v1064_v7 }
 0x379   :  { %v1900_v15 = vpack.c.bf16 %v1002_v20, %v1070_v14  ;;  %v1902_v17 = vpack.c.bf16 %v2383_v4, %v1069_v46 }
 0x37a   :  { %1899 = vmatpush1.bf16.msra.mxu0 %v1898_v6 }
 0x37b   :  { %1901 = vmatprep.subr.bf16.mxu0 %v1900_v15 }
 0x37e   :  { %1903 = vmatpush1.bf16.msra.mxu0 %v1902_v17 }
 0x37f   :  { %1089 = vmatprep.subr.mxu0 %v1072_v0 }
 0x382   :  { %1090 = vmatpush1.msra.mxu0 %v1071_v45 }
 0x383   :  { %1848 = vmatmul.mubr.msk.f32.vlgmr.msra.gmra.mrb[2].mxu0 %vm197_vm12, %v2262_v22 }
 0x384   :  { %1723 = vmatprep.mubr.f32.mxu0 %v2079_v30 }
 0x3bc   :  { %v496_v18 = vpop.f32.mrb[0].mxu1 }
 0x3bd   :  { %v497_v20 = vadd.f32 %v496_v18, %v2430_v41  ;;  %v498_v21 = vpop.f32.mrb[1].mxu1 }
 0x3be   :  { %v499_v4 = vadd.f32 %v498_v21, %v2430_v41 }
 0x3bf   :  { %v2468_v1 = vmax.f32 %v497_v20, 0.0 }
 0x3c0   :  { %v2470_v23 = vmax.f32 %v499_v4, 0.0 }
 0x3c1   :  { %508 = vrot.lane.b32.xlu0 %v2468_v1, %s2074_s25 }
 0x3c2   :  { %504 = vrot.lane.b32.xlu1 %v2470_v23, %s2074_s25  ;;  %v1994_v22 = vpack.i.bf16 %v2470_v23, %v2468_v1  ;;  %v1989_v24 = vpack.i.bf16 %v2468_v1, %v2470_v23 }
 0x3c5   :  { %516 = vrot.lane.b32.xlu0 %v2470_v23, %s2075_s26 }
 0x3c6   :  { %514 = vrot.lane.b32.xlu1 %v2468_v1, %s2075_s26 }
 0x3c9   :  { %1995 = vrot.lane.b32.xlu0 %v1994_v22, %s2077_s0 }
 0x3ca   :  { %1990 = vrot.lane.b32.xlu1 %v1989_v24, %s2078_s29 }
 0x433   :  { %v509_v25 = vpop.permute.xlu0 %508 }
 0x434   :  { %v505_v26 = vpop.permute.xlu1 %504 }
 0x435   :  { %v513_v33 = vsel %vm71_vm3, %v505_v26, %v509_v25  ;;  %v2491_v35 = vsel %vm71_vm3, %v509_v25, %v505_v26 }
 0x436   :  { %v598_v22 = vrot.slane %v2491_v35, 6 }
 0x437   :  { %v517_v31 = vpop.permute.xlu0 %516 }
 0x438   :  { %v515_v32 = vpop.permute.xlu1 %514 }
 0x439   :  { %v2488_v34 = vsel %vm80_vm2, %v515_v32, %v517_v31  ;;  %v522_v40 = vsel %vm80_vm2, %v517_v31, %v515_v32 }
 0x43a   :  { %v2496_v36 = vsel %vm48_vm4, %v2488_v34, %v513_v33  ;;  %578 = vrot.lane.b32.xlu0 %v2488_v34, %s2078_s29  ;;  %v2510_v42 = vsel %vm51_vm5, %v2491_v35, %v522_v40 }
 0x43b   :  { %v1999_v37 = vpack.i.bf16 %v2496_v36, %v2491_v35  ;;  %v2004_v39 = vpack.i.bf16 %v2491_v35, %v2496_v36  ;;  %v1996_v38 = vpop.permute.xlu0 %1995  ;;  %v597_v24 = vrot.slane %v2496_v36, 6 }
 0x43c   :  { %v1991_v44 = vpop.permute.xlu1 %1990  ;;  %v1998_v54 = vunpack.i.h.bf16 %v1996_v38  ;;  %v1997_v55 = vunpack.i.l.bf16 %v1996_v38 }
 0x43d   :  { %2000 = vrot.lane.b32.xlu1 %v1999_v37, %s2078_s29  ;;  %v1993_v56 = vunpack.i.h.bf16 %v1991_v44  ;;  %v1992_v57 = vunpack.i.l.bf16 %v1991_v44 }
 0x43e   :  { %2005 = vrot.lane.b32.xlu0 %v2004_v39, %s2077_s0  ;;  %v564_v59 = vsel %vm114_vm8, %v1997_v55, %v1998_v54  ;;  %v568_v60 = vsel %vm114_vm8, %v1998_v54, %v1997_v55 }
 0x43f   :  { %v556_v62 = vsel %vm105_vm9, %v1993_v56, %v1992_v57  ;;  %v559_v63 = vsel %vm105_vm9, %v1992_v57, %v1993_v56 }
 0x440   :  { %v571_v46 = vsel %vm142_vm10, %v559_v63, %v564_v59  ;;  %v572_v15 = vsel %vm143_vm11, %v556_v62, %v568_v60  ;;  %v569_v25 = vsel %vm129_vm6, %v564_v59, %v559_v63  ;;  %v570_v26 = vsel %vm130_vm7, %v568_v60, %v556_v62 }
 0x441   :  { %574 = vrot.lane.b32.xlu1 %v2510_v42, %s2078_s29  ;;  %v615_v33 = vrot.slane %v571_v46, 6  ;;  %v616_v37 = vrot.slane %v572_v15, 6  ;;  %v609_v57 = vrot.slane %v569_v25, 2 }
 0x442   :  { %586 = vrot.lane.b32.xlu0 %v2510_v42, %s2077_s0 }
 0x443   :  { %v635_v59 = vsel %vm400_vm13, %v2468_v1, %v615_v33 }
 0x445   :  { %584 = vrot.lane.b32.xlu1 %v2488_v34, %s2077_s0 }
 0x456   :  { %v1139_v43 = vpop.f32.mrb[2].mxu0 }
 0x457   :  { %v1140_v47 = vadd.f32 %v1139_v43, %v2269_v19  ;;  %v1141_v48 = vpop.f32.mrb[3].mxu0 }
 0x458   :  { %v1142_v50 = vadd.f32 %v1141_v48, %v2269_v19 }
 0x459   :  { %v2520_v49 = vmax.f32 %v1140_v47, 0.0 }
 0x45a   :  { %v2522_v51 = vmax.f32 %v1142_v50, 0.0 }
 0x45b   :  { %1151 = vrot.lane.b32.xlu0 %v2520_v49, %s2074_s25 }
 0x45c   :  { %1858 = vmatprep.subr.msk.mxu0 %vm400_vm13, %v2522_v51  ;;  %1147 = vrot.lane.b32.xlu1 %v2522_v51, %s2074_s25  ;;  %v2010_v19 = vpack.i.bf16 %v2520_v49, %v2522_v51  ;;  %v2015_v53 = vpack.i.bf16 %v2522_v51, %v2520_v49 }
 0x45d   :  { %1859 = vmatpush1.msk.msra.mxu0 %vm400_vm13, %v2520_v49 }
 0x45f   :  { %1159 = vrot.lane.b32.xlu0 %v2522_v51, %s2075_s26 }
 0x460   :  { %1157 = vrot.lane.b32.xlu1 %v2520_v49, %s2075_s26 }
 0x463   :  { %2011 = vrot.lane.b32.xlu0 %v2010_v19, %s2078_s29  ;;  %v625_v19 = vrot.slane %v2488_v34, 2  ;;  %v636_v34 = vsel %vm400_vm13, %v2470_v23, %v616_v37 }
 0x464   :  { %643 = vperm.xlu1 %2009, %v57_v52   ;;  %v626_v52 = vrot.slane %v2510_v42, 2 }
 0x468   :  { %2016 = vrot.lane.b32.xlu1 %v2015_v53, %s2077_s0 }
 0x4ac   :  { %v579_v58 = vpop.permute.xlu0 %578 }
 0x4af   :  { %v2001_v61 = vpop.permute.xlu1 %2000 }
 0x4b0   :  { %v2003_v2 = vunpack.i.h.bf16 %v2001_v61  ;;  %v2002_v3 = vunpack.i.l.bf16 %v2001_v61  ;;  %v2006_v5 = vpop.permute.xlu0 %2005 }
 0x4b1   :  { %v2008_v6 = vunpack.i.h.bf16 %v2006_v5  ;;  %v2007_v7 = vunpack.i.l.bf16 %v2006_v5 }
 0x4b2   :  { %v534_v8 = vsel %vm105_vm9, %v2003_v2, %v2002_v3  ;;  %v537_v14 = vsel %vm105_vm9, %v2002_v3, %v2003_v2 }
 0x4b3   :  { %v542_v17 = vsel %vm114_vm8, %v2007_v7, %v2008_v6  ;;  %v546_v0 = vsel %vm114_vm8, %v2008_v6, %v2007_v7  ;;  %v575_v45 = vpop.permute.xlu1 %574  ;;  %v2601_v7 = vld [vmem:[%s2866_s6] sm:$0x3] }
 0x4b4   :  { %v547_v18 = vsel %vm129_vm6, %v542_v17, %v537_v14  ;;  %v548_v20 = vsel %vm130_vm7, %v546_v0, %v534_v8  ;;  %v549_v21 = vsel %vm142_vm10, %v537_v14, %v542_v17  ;;  %v550_v4 = vsel %vm143_vm11, %v534_v8, %v546_v0  ;;  %v587_v40 = vpop.permute.xlu0 %586  ;;  %v2616_v14 = vld [vmem:[%s2869_s9] sm:$0xff] }
 0x4b5   :  { %v603_v31 = vrot.slane %v549_v21, 4  ;;  %v604_v32 = vrot.slane %v550_v4, 4  ;;  %v629_v39 = vsel %vm400_vm13, %v547_v18, %v597_v24  ;;  %v630_v47 = vsel %vm400_vm13, %v548_v20, %v598_v22  ;;  %v58_v4 = vld [vmem:[%s2868_s8] sm:$0xff] }
 0x4b6   :  { %v580_v35 = vsel %vm105_vm9, %v579_v58, %v575_v45  ;;  %v583_v36 = vsel %vm105_vm9, %v575_v45, %v579_v58  ;;  %v610_v58 = vrot.slane %v570_v26, 2  ;;  %1860 = vmatmul.mubr.msk.f32.vlgmr.msra.gmra.mrb[4].mxu0 %vm728_vm1, %v58_v4 }
 0x4b7   :  { %v585_v43 = vpop.permute.xlu1 %584  ;;  %v632_v55 = vsel %vm403_vm14, %v630_v47, %v604_v32  ;;  %v631_v56 = vsel %vm403_vm14, %v629_v39, %v603_v31  ;;  %1800 = vmatprep.mubr.f32.mxu0 %v2079_v30 }
 0x4b8   :  { %v588_v48 = vsel %vm114_vm8, %v585_v43, %v587_v40  ;;  %v592_v50 = vsel %vm114_vm8, %v587_v40, %v585_v43  ;;  %v634_v61 = vsel %vm406_vm15, %v632_v55, %v610_v58  ;;  %v633_v63 = vsel %vm406_vm15, %v631_v56, %v609_v57 }
 0x4b9   :  { %v593_v53 = vsel %vm129_vm6, %v588_v48, %v583_v36  ;;  %v594_v38 = vsel %vm130_vm7, %v592_v50, %v580_v35  ;;  %v596_v6 = vsel %vm143_vm11, %v580_v35, %v592_v50  ;;  %v595_v8 = vsel %vm142_vm10, %v583_v36, %v588_v48 }
 0x4ba   :  { %v621_v44 = vrot.slane %v593_v53, 4  ;;  %v622_v54 = vrot.slane %v594_v38, 4 }
 0x4bc   :  { %v637_v42 = vsel %vm403_vm14, %v635_v59, %v621_v44  ;;  %v638_v60 = vsel %vm403_vm14, %v636_v34, %v622_v54 }
 0x4bd   :  { %v640_v62 = vsel %vm406_vm15, %v638_v60, %v626_v52  ;;  %v639_v2 = vsel %vm406_vm15, %v637_v42, %v625_v19 }
 0x4be   :  { %v1884_v3 = vpack.c.bf16 %v640_v62, %v634_v61  ;;  %v1886_v5 = vpack.c.bf16 %v639_v2, %v633_v63 }
 0x4c0   :  { %1885 = vmatprep.subr.bf16.mxu1 %v1884_v3 }
 0x4c1   :  { %1887 = vmatpush1.bf16.msra.mxu1 %v1886_v5 }
 0x4c2   :  { %1834 = vmatprep.subr.msk.mxu1 %vm400_vm13, %v596_v6 }
 0x4c5   :  { %1835 = vmatpush1.msk.msra.mxu1 %vm400_vm13, %v595_v8 }
 0x4c6   :  { %1836 = vmatmul.mubr.msk.f32.vlgmr.msra.gmra.mrb[2].mxu1 %vm420_vm0, %v2601_v7  ;;  %1837 = vmatprep.subr.msk.mxu1 %vm400_vm13, %v2470_v23 }
 0x4c7   :  { %1838 = vmatpush1.msk.msra.mxu1 %vm400_vm13, %v2468_v1  ;;  %800 = vmatprep.mubr.f32.mxu1 %v2079_v30 }
 0x4c8   :  { %1840 = vmatprep.subr.msk.mxu1 %vm400_vm13, %v2275_v29 }
 0x4ca   :  { %1839 = vmatmul.mubr.msk.f32.vlgmr.msra.gmra.mrb[4].mxu1 %vm728_vm1, %v2616_v14 }
 0x4cb   :  { %1841 = vmatpush1.msk.msra.mxu1 %vm400_vm13, %v2273_v28  ;;  %878 = vmatprep.mubr.f32.mxu1 %v2079_v30 }
 0x4cd   :  { %v1152_v1 = vpop.permute.xlu0 %1151 }
 0x4ce   :  { %v1148_v23 = vpop.permute.xlu1 %1147 }
 0x4cf   :  { %v1156_v17 = vsel %vm71_vm3, %v1148_v23, %v1152_v1  ;;  %v1153_v45 = vsel %vm71_vm3, %v1152_v1, %v1148_v23 }
 0x4d0   :  { %v1241_v60 = vrot.slane %v1153_v45, 6 }
 0x4d1   :  { %v1160_v46 = vpop.permute.xlu0 %1159 }
 0x4d2   :  { %v1158_v15 = vpop.permute.xlu1 %1157  ;;  %1842 = vmatmul.mubr.msk.f32.vlgmr.msra.gmra.mrb[4].mxu1 %vm728_vm1, %v58_v4 }
 0x4d3   :  { %v2627_v0 = vsel %vm80_vm2, %v1158_v15, %v1160_v46  ;;  %v1165_v28 = vsel %vm80_vm2, %v1160_v46, %v1158_v15  ;;  %958 = vmatprep.mubr.f32.mxu1 %v2079_v30 }
 0x4d4   :  { %v1166_v29 = vsel %vm48_vm4, %v2627_v0, %v1156_v17  ;;  %v2638_v21 = vsel %vm51_vm5, %v1153_v45, %v1165_v28 }
 0x4d5   :  { %v2025_v18 = vpack.i.bf16 %v1153_v45, %v1166_v29  ;;  %v2020_v20 = vpack.i.bf16 %v1166_v29, %v1153_v45  ;;  %v2012_v25 = vpop.permute.xlu0 %2011  ;;  %v1240_v61 = vrot.slane %v1166_v29, 6 }
 0x4d6   :  { %v2014_v32 = vunpack.i.h.bf16 %v2012_v25  ;;  %v2013_v33 = vunpack.i.l.bf16 %v2012_v25 }
 0x4d7   :  { %2026 = vrot.lane.b32.xlu1 %v2025_v18, %s2077_s0  ;;  %2021 = vrot.lane.b32.xlu0 %v2020_v20, %s2078_s29  ;;  %v1268_v18 = vrot.slane %v2627_v0, 2  ;;  %v1269_v20 = vrot.slane %v2638_v21, 2 }
 0x4d8   :  { %v1199_v38 = vsel %vm105_vm9, %v2014_v32, %v2013_v33  ;;  %v1202_v44 = vsel %vm105_vm9, %v2013_v33, %v2014_v32 }
 0x4db   :  { %1221 = vrot.lane.b32.xlu1 %v2627_v0, %s2078_s29  ;;  %1217 = vrot.lane.b32.xlu0 %v2638_v21, %s2078_s29 }
 0x4df   :  { %1229 = vrot.lane.b32.xlu1 %v2638_v21, %s2077_s0  ;;  %1227 = vrot.lane.b32.xlu0 %v2627_v0, %s2077_s0 }
 0x4e3   :  { %v2655_v22 = vpop.permute.xlu1 %643 }
 0x4e7   :  { %v2017_v24 = vpop.permute.xlu1 %2016 }
 0x4e8   :  { %v2019_v26 = vunpack.i.h.bf16 %v2017_v24  ;;  %v2018_v31 = vunpack.i.l.bf16 %v2017_v24 }
 0x4ea   :  { %v1207_v36 = vsel %vm114_vm8, %v2018_v31, %v2019_v26  ;;  %v1211_v48 = vsel %vm114_vm8, %v2019_v26, %v2018_v31 }
 0x4eb   :  { %v1214_v58 = vsel %vm142_vm10, %v1202_v44, %v1207_v36  ;;  %v1215_v59 = vsel %vm143_vm11, %v1199_v38, %v1211_v48  ;;  %v1212_v62 = vsel %vm129_vm6, %v1207_v36, %v1202_v44  ;;  %v1213_v63 = vsel %vm130_vm7, %v1211_v48, %v1199_v38  ;;  %v2710_v38 = vld [vmem:[%s2870_s10] sm:$0xff] }
 0x4ec   :  { %v1258_v5 = vrot.slane %v1214_v58, 6  ;;  %v1259_v6 = vrot.slane %v1215_v59, 6  ;;  %v1252_v32 = vrot.slane %v1212_v62, 2  ;;  %v1253_v33 = vrot.slane %v1213_v63, 2 }
 0x4ee   :  { %v1279_v0 = vsel %vm400_vm13, %v2522_v51, %v1259_v6 }
 0x549   :  { %v2027_v37 = vpop.permute.xlu1 %2026  ;;  %v2022_v39 = vpop.permute.xlu0 %2021 }
 0x54a   :  { %v2029_v40 = vunpack.i.h.bf16 %v2027_v37  ;;  %v2028_v43 = vunpack.i.l.bf16 %v2027_v37  ;;  %v2024_v47 = vunpack.i.h.bf16 %v2022_v39  ;;  %v2023_v35 = vunpack.i.l.bf16 %v2022_v39 }
 0x54b   :  { %v1278_v37 = vsel %vm400_vm13, %v2520_v49, %v1258_v5 }
 0x54c   :  { %v1185_v50 = vsel %vm114_vm8, %v2028_v43, %v2029_v40  ;;  %v1189_v19 = vsel %vm114_vm8, %v2029_v40, %v2028_v43  ;;  %v1177_v52 = vsel %vm105_vm9, %v2024_v47, %v2023_v35  ;;  %v1180_v53 = vsel %vm105_vm9, %v2023_v35, %v2024_v47 }
 0x54d   :  { %v1192_v54 = vsel %vm142_vm10, %v1180_v53, %v1185_v50  ;;  %v1193_v55 = vsel %vm143_vm11, %v1177_v52, %v1189_v19  ;;  %v1222_v56 = vpop.permute.xlu1 %1221  ;;  %v1218_v57 = vpop.permute.xlu0 %1217  ;;  %v1190_v34 = vsel %vm129_vm6, %v1185_v50, %v1180_v53  ;;  %v1191_v42 = vsel %vm130_vm7, %v1189_v19, %v1177_v52 }
 0x54e   :  { %v1246_v2 = vrot.slane %v1192_v54, 4  ;;  %v1247_v3 = vrot.slane %v1193_v55, 4  ;;  %v1272_v8 = vsel %vm400_vm13, %v1190_v34, %v1240_v61  ;;  %v1273_v46 = vsel %vm400_vm13, %v1191_v42, %v1241_v60 }
 0x54f   :  { %v1223_v15 = vsel %vm105_vm9, %v1222_v56, %v1218_v57  ;;  %v1226_v17 = vsel %vm105_vm9, %v1218_v57, %v1222_v56 }
 0x550   :  { %v1275_v26 = vsel %vm403_vm14, %v1273_v46, %v1247_v3  ;;  %v1274_v31 = vsel %vm403_vm14, %v1272_v8, %v1246_v2 }
 0x551   :  { %v1230_v1 = vpop.permute.xlu1 %1229  ;;  %v1228_v23 = vpop.permute.xlu0 %1227  ;;  %v1277_v40 = vsel %vm406_vm15, %v1275_v26, %v1253_v33  ;;  %v1276_v47 = vsel %vm406_vm15, %v1274_v31, %v1252_v32 }
 0x552   :  { %v1231_v45 = vsel %vm114_vm8, %v1228_v23, %v1230_v1  ;;  %v1235_v29 = vsel %vm114_vm8, %v1230_v1, %v1228_v23 }
 0x553   :  { %v1236_v28 = vsel %vm129_vm6, %v1231_v45, %v1226_v17  ;;  %v1237_v4 = vsel %vm130_vm7, %v1235_v29, %v1223_v15  ;;  %v1239_v44 = vsel %vm143_vm11, %v1223_v15, %v1235_v29  ;;  %v1238_v54 = vsel %vm142_vm10, %v1226_v17, %v1231_v45 }
 0x554   :  { %v1264_v24 = vrot.slane %v1236_v28, 4  ;;  %v1265_v25 = vrot.slane %v1237_v4, 4 }
 0x556   :  { %v1280_v21 = vsel %vm403_vm14, %v1278_v37, %v1264_v24  ;;  %v1281_v39 = vsel %vm403_vm14, %v1279_v0, %v1265_v25 }
 0x557   :  { %v1283_v43 = vsel %vm406_vm15, %v1281_v39, %v1269_v20  ;;  %v1282_v35 = vsel %vm406_vm15, %v1280_v21, %v1268_v18 }
 0x558   :  { %v1904_v36 = vpack.c.bf16 %v1283_v43, %v1277_v40  ;;  %v1906_v48 = vpack.c.bf16 %v1282_v35, %v1276_v47 }
 0x599   :  { %v721_v50 = vpop.f32.mrb[2].mxu1 }
 0x59a   :  { %v722_v49 = vadd.f32 %v721_v50, %v2655_v22  ;;  %v723_v19 = vpop.f32.mrb[3].mxu1 }
 0x59b   :  { %v724_v51 = vadd.f32 %v723_v19, %v2655_v22 }
 0x59c   :  { %v726_v53 = vmax.f32 %v722_v49, 0.0 }
 0x59d   :  { %v727_v52 = vmax.f32 %v724_v51, 0.0 }
 0x59f   :  { %1843 = vmatprep.subr.msk.mxu1 %vm400_vm13, %v727_v52 }
 0x5a0   :  { %1844 = vmatpush1.msk.msra.mxu1 %vm400_vm13, %v726_v53 }
 0x5a1   :  { %1845 = vmatmul.mubr.msk.f32.vlgmr.msra.gmra.mrb[4].mxu1 %vm728_vm1, %v2710_v38  ;;  %1905 = vmatprep.subr.bf16.mxu1 %v1904_v36 }
 0x5a2   :  { %1907 = vmatpush1.bf16.msra.mxu1 %v1906_v48  ;;  %1354 = vmatprep.mubr.f32.mxu1 %v2079_v30 }
 0x5a3   :  { %1849 = vmatprep.subr.msk.mxu1 %vm400_vm13, %v1239_v44 }
 0x5a6   :  { %1850 = vmatpush1.msk.msra.mxu1 %vm400_vm13, %v1238_v54 }
 0x5a7   :  { %1851 = vmatmul.mubr.msk.f32.vlgmr.msra.gmra.mrb[6].mxu1 %vm420_vm0, %v2394_v9 }
 0x5a8   :  { %1571 = vmatprep.mubr.f32.mxu1 %v2079_v30 }
 0x674   :  { %v2726_v55 = vpop.f32.mrb[4].mxu1 }
 0x675   :  { %v2728_v56 = vpop.f32.mrb[5].mxu1 }
 0x67a   :  { %v1356_v57 = vpop.f32.mrb[6].mxu1 }
 0x67b   :  { %v1357_v58 = vadd.f32 %v1356_v57, %v2430_v41  ;;  %v1358_v59 = vpop.f32.mrb[7].mxu1 }
 0x67c   :  { %v1359_v34 = vadd.f32 %v1358_v59, %v2430_v41 }
 0x67d   :  { %v2732_v42 = vmax.f32 %v1357_v58, 0.0 }
 0x67e   :  { %v2734_v60 = vmax.f32 %v1359_v34, 0.0 }
 0x67f   :  { %1368 = vrot.lane.b32.xlu1 %v2732_v42, %s2074_s25 }
 0x680   :  { %1364 = vrot.lane.b32.xlu0 %v2734_v60, %s2074_s25  ;;  %v2035_v9 = vpack.i.bf16 %v2734_v60, %v2732_v42  ;;  %v2030_v41 = vpack.i.bf16 %v2732_v42, %v2734_v60 }
 0x683   :  { %1376 = vrot.lane.b32.xlu1 %v2734_v60, %s2075_s26 }
 0x684   :  { %1374 = vrot.lane.b32.xlu0 %v2732_v42, %s2075_s26 }
 0x687   :  { %2036 = vrot.lane.b32.xlu1 %v2035_v9, %s2077_s0 }
 0x688   :  { %2031 = vrot.lane.b32.xlu0 %v2030_v41, %s2078_s29 }
 0x6f1   :  { %v1369_v61 = vpop.permute.xlu1 %1368 }
 0x6f2   :  { %v1365_v62 = vpop.permute.xlu0 %1364 }
 0x6f3   :  { %v1373_v3 = vsel %vm71_vm3, %v1365_v62, %v1369_v61  ;;  %v1370_v6 = vsel %vm71_vm3, %v1369_v61, %v1365_v62 }
 0x6f4   :  { %v1458_v52 = vrot.slane %v1370_v6, 6 }
 0x6f5   :  { %v1377_v63 = vpop.permute.xlu1 %1376 }
 0x6f6   :  { %v1375_v2 = vpop.permute.xlu0 %1374 }
 0x6f7   :  { %v2752_v5 = vsel %vm80_vm2, %v1375_v2, %v1377_v63  ;;  %v1382_v46 = vsel %vm80_vm2, %v1377_v63, %v1375_v2 }
 0x6f8   :  { %v1383_v8 = vsel %vm48_vm4, %v2752_v5, %v1373_v3  ;;  %1438 = vrot.lane.b32.xlu1 %v2752_v5, %s2078_s29  ;;  %v2765_v15 = vsel %vm51_vm5, %v1370_v6, %v1382_v46 }
 0x6f9   :  { %v2040_v1 = vpack.i.bf16 %v1383_v8, %v1370_v6  ;;  %v2045_v23 = vpack.i.bf16 %v1370_v6, %v1383_v8  ;;  %v2037_v17 = vpop.permute.xlu1 %2036  ;;  %v1457_v53 = vrot.slane %v1383_v8, 6  ;;  %v1485_v8 = vrot.slane %v2752_v5, 2 }
 0x6fa   :  { %v2032_v45 = vpop.permute.xlu0 %2031  ;;  %v2039_v29 = vunpack.i.h.bf16 %v2037_v17  ;;  %v2038_v27 = vunpack.i.l.bf16 %v2037_v17 }
 0x6fb   :  { %2041 = vrot.lane.b32.xlu0 %v2040_v1, %s2078_s29  ;;  %v2034_v18 = vunpack.i.h.bf16 %v2032_v45  ;;  %v2033_v20 = vunpack.i.l.bf16 %v2032_v45  ;;  %v1486_v1 = vrot.slane %v2765_v15, 2 }
 0x6fc   :  { %2046 = vrot.lane.b32.xlu1 %v2045_v23, %s2077_s0  ;;  %v1424_v4 = vsel %vm114_vm8, %v2038_v27, %v2039_v29  ;;  %v1428_v24 = vsel %vm114_vm8, %v2039_v29, %v2038_v27 }
 0x6fd   :  { %v1416_v26 = vsel %vm105_vm9, %v2034_v18, %v2033_v20  ;;  %v1419_v31 = vsel %vm105_vm9, %v2033_v20, %v2034_v18 }
 0x6fe   :  { %v1431_v43 = vsel %vm142_vm10, %v1419_v31, %v1424_v4  ;;  %v1432_v47 = vsel %vm143_vm11, %v1416_v26, %v1428_v24  ;;  %v1429_v44 = vsel %vm129_vm6, %v1424_v4, %v1419_v31  ;;  %v1430_v54 = vsel %vm130_vm7, %v1428_v24, %v1416_v26 }
 0x6ff   :  { %1434 = vrot.lane.b32.xlu0 %v2765_v15, %s2078_s29  ;;  %v1475_v59 = vrot.slane %v1431_v43, 6  ;;  %v1476_v34 = vrot.slane %v1432_v47, 6  ;;  %v1469_v27 = vrot.slane %v1429_v44, 2  ;;  %v1470_v18 = vrot.slane %v1430_v54, 2 }
 0x700   :  { %1446 = vrot.lane.b32.xlu1 %v2765_v15, %s2077_s0 }
 0x701   :  { %v1495_v20 = vsel %vm400_vm13, %v2732_v42, %v1475_v59 }
 0x703   :  { %1444 = vrot.lane.b32.xlu0 %v2752_v5, %s2077_s0  ;;  %v1496_v5 = vsel %vm400_vm13, %v2734_v60, %v1476_v34 }
 0x707   :  { %969 = vperm.xlu0 %1948, %v61_v16  }
 0x76a   :  { %v1439_v28 = vpop.permute.xlu1 %1438 }
 0x76d   :  { %v2042_v25 = vpop.permute.xlu0 %2041 }
 0x76e   :  { %v2044_v32 = vunpack.i.h.bf16 %v2042_v25  ;;  %v2043_v33 = vunpack.i.l.bf16 %v2042_v25  ;;  %v2047_v37 = vpop.permute.xlu1 %2046 }
 0x76f   :  { %v2049_v0 = vunpack.i.h.bf16 %v2047_v37  ;;  %v2048_v21 = vunpack.i.l.bf16 %v2047_v37 }
 0x770   :  { %v1394_v39 = vsel %vm105_vm9, %v2044_v32, %v2043_v33  ;;  %v1397_v40 = vsel %vm105_vm9, %v2043_v33, %v2044_v32 }
 0x771   :  { %v1402_v35 = vsel %vm114_vm8, %v2048_v21, %v2049_v0  ;;  %v1406_v36 = vsel %vm114_vm8, %v2049_v0, %v2048_v21  ;;  %v1435_v48 = vpop.permute.xlu0 %1434 }
 0x772   :  { %v1407_v50 = vsel %vm129_vm6, %v1402_v35, %v1397_v40  ;;  %v1408_v49 = vsel %vm130_vm7, %v1406_v36, %v1394_v39  ;;  %v1409_v19 = vsel %vm142_vm10, %v1397_v40, %v1402_v35  ;;  %v1410_v51 = vsel %vm143_vm11, %v1394_v39, %v1406_v36  ;;  %v1447_v41 = vpop.permute.xlu1 %1446 }
 0x773   :  { %v1463_v57 = vrot.slane %v1409_v19, 4  ;;  %v1464_v58 = vrot.slane %v1410_v51, 4  ;;  %v1489_v9 = vsel %vm400_vm13, %v1407_v50, %v1457_v53  ;;  %v1490_v62 = vsel %vm400_vm13, %v1408_v49, %v1458_v52 }
 0x774   :  { %v1440_v63 = vsel %vm105_vm9, %v1439_v28, %v1435_v48  ;;  %v1443_v2 = vsel %vm105_vm9, %v1435_v48, %v1439_v28 }
 0x775   :  { %v1445_v61 = vpop.permute.xlu0 %1444  ;;  %v1492_v45 = vsel %vm403_vm14, %v1490_v62, %v1464_v58  ;;  %v1491_v29 = vsel %vm403_vm14, %v1489_v9, %v1463_v57 }
 0x776   :  { %v1448_v3 = vsel %vm114_vm8, %v1445_v61, %v1447_v41  ;;  %v1452_v6 = vsel %vm114_vm8, %v1447_v41, %v1445_v61  ;;  %v1494_v11 = vsel %vm406_vm15, %v1492_v45, %v1470_v18  ;;  %v1493_v4 = vsel %vm406_vm15, %v1491_v29, %v1469_v27 }
 0x777   :  { %v1453_v23 = vsel %vm129_vm6, %v1448_v3, %v1443_v2  ;;  %v1454_v46 = vsel %vm130_vm7, %v1452_v6, %v1440_v63  ;;  %v1456_v31 = vsel %vm143_vm11, %v1440_v63, %v1452_v6  ;;  %v1455_v32 = vsel %vm142_vm10, %v1443_v2, %v1448_v3 }
 0x778   :  { %v1481_v16 = vrot.slane %v1453_v23, 4  ;;  %v1482_v17 = vrot.slane %v1454_v46, 4 }
 0x77a   :  { %v1497_v10 = vsel %vm403_vm14, %v1495_v20, %v1481_v16  ;;  %v1498_v15 = vsel %vm403_vm14, %v1496_v5, %v1482_v17 }
 0x77b   :  { %v1500_v28 = vsel %vm406_vm15, %v1498_v15, %v1486_v1  ;;  %v1499_v24 = vsel %vm406_vm15, %v1497_v10, %v1485_v8 }
 0x77c   :  { %v1908_v25 = vpack.c.bf16 %v1500_v28, %v1494_v11  ;;  %v1910_v26 = vpack.c.bf16 %v1499_v24, %v1493_v4 }
 0x77e   :  { %1909 = vmatprep.subr.bf16.mxu1 %v1908_v25 }
 0x77f   :  { %1911 = vmatpush1.bf16.msra.mxu1 %v1910_v26 }
 0x780   :  { %1852 = vmatprep.subr.msk.mxu1 %vm400_vm13, %v1456_v31 }
 0x783   :  { %1853 = vmatpush1.msk.msra.mxu1 %vm400_vm13, %v1455_v32 }
 0x784   :  { %1854 = vmatmul.mubr.msk.f32.vlgmr.msra.gmra.mrb[8].mxu1 %vm420_vm0, %v2601_v7  ;;  %1855 = vmatprep.subr.msk.mxu1 %vm400_vm13, %v2734_v60 }
 0x785   :  { %1856 = vmatpush1.msk.msra.mxu1 %vm400_vm13, %v2732_v42  ;;  %1648 = vmatprep.mubr.f32.mxu1 %v2079_v30 }
 0x786   :  { %v970_v13 = vpop.permute.xlu0 %969 }
 0x787   :  { %v972_v33 = vadd.f32 %v970_v13, %v2726_v55  ;;  %v973_v37 = vadd.f32 %v970_v13, %v2728_v56 }
 0x788   :  { %1857 = vmatmul.mubr.msk.f32.vlgmr.msra.gmra.mrb[10].mxu1 %vm728_vm1, %v2616_v14 }
 0x789   :  { %974 = vst [vmem:[#allocation2] sm:$0xff] %v972_v33  ;;  %975 = vst [vmem:[#allocation2 + $0x8] sm:$0xff] %v973_v37 }
 0x857   :  { %v1573_v12 = vpop.f32.mrb[8].mxu1 }
 0x858   :  { %v1574_v7 = vadd.f32 %v1573_v12, %v2655_v22  ;;  %v1575_v0 = vpop.f32.mrb[9].mxu1 }
 0x859   :  { %v1576_v60 = vadd.f32 %v1575_v0, %v2655_v22 }
 0x85a   :  { %v1578_v39 = vmax.f32 %v1574_v7, 0.0 }
 0x85b   :  { %v1579_v21 = vmax.f32 %v1576_v60, 0.0  ;;  %v1650_v42 = vpop.f32.mrb[10].mxu1 }
 0x85c   :  { %v1652_v30 = vpop.f32.mrb[11].mxu1 }
 0x85d   :  { %1861 = vmatprep.subr.msk.mxu0 %vm400_vm13, %v1579_v21 }
 0x85e   :  { %1862 = vmatpush1.msk.msra.mxu0 %vm400_vm13, %v1578_v39 }
 0x85f   :  { %1863 = vmatmul.mubr.msk.f32.vlgmr.msra.gmra.mrb[4].mxu0 %vm728_vm1, %v2710_v38 }
 0x932   :  { %v1802_v14 = vpop.f32.mrb[4].mxu0 }
 0x933   :  { %v1912_v55 = vadd.f32 %v1802_v14, %v1650_v42  ;;  %v1804_v56 = vpop.f32.mrb[5].mxu0 }
 0x934   :  { %v1913_v40 = vadd.f32 %v1804_v56, %v1652_v30 }
 0x935   :  { %v1809_v43 = vadd.f32 %v1912_v55, %v970_v13 }
 0x936   :  { %v1810_v47 = vadd.f32 %v1913_v40, %v970_v13 }
 0x937   :  { %1812 = vst [vmem:[#allocation2 + $0x10] sm:$0xff] %v1809_v43 }
 0x938   :  { %1813 = vst [vmem:[#allocation2 + $0x18] sm:$0xff] %v1810_v47 }
 0x939   :  { %2061 = shalt.err (!%p2058_p4)
}
 0x93a   :  { %s2062_s30 = scalar_lea.hbm %s2872_s12, 512 }
 0x93b   :  { %p2063_p5 = scmp.ne.s32.totalorder %s2872_s12, %s2062_s30  ;;  %p2066_p6 = scmp.lt.u32.totalorder %s2062_s30, %s2872_s12 }
 0x93d   :  { %p2068_p7 = pnand %p2066_p6, %p2063_p5 }
 0x93f   :  { %2071 = shalt.err (!%p2068_p7)
}
 0x940   :  { %s2081_s15 = smov 256  }
 0x941   :  { %1825 = dma.vmem_to_hbm [thread:$0]  %s1820_s27, 512, %s2872_s12, [#allocation3], %s2081_s15, %s2081_s15, %s2074_s25  }
 0x942   :  { %2072 = dma.done.wait [#allocation3], 512  }
 0x943   :  { %2073 = vsyncadd [#allocation3], 4294966784 }
 0x944   :  { %1829 = vsyncpa [#allocation3], 1 }

</bundles_post_ra>
